<compile_context>
chip_gen: v6e
topology: v6e:2x2x1
jax: 0.10.0
libtpu: 0.0.40
codegen_flags: <defaults>
</compile_context>

<pallas_src>
import numpy as np
import jax
import jax.numpy as jnp
from jax.experimental import pallas as pl
from jax.experimental.pallas import tpu as pltpu


# ----------------------------------------------------------------------------
# Anchor generation (host-side numpy, identical to the reference code)
# ----------------------------------------------------------------------------
def _whctrs(anchor):
    w = anchor[2] - anchor[0] + 1
    h = anchor[3] - anchor[1] + 1
    x_ctr = anchor[0] + 0.5 * (w - 1)
    y_ctr = anchor[1] + 0.5 * (h - 1)
    return w, h, x_ctr, y_ctr


def _mkanchors(ws, hs, x_ctr, y_ctr):
    ws = ws[:, np.newaxis]
    hs = hs[:, np.newaxis]
    return np.hstack((x_ctr - 0.5 * (ws - 1), y_ctr - 0.5 * (hs - 1),
                      x_ctr + 0.5 * (ws - 1), y_ctr + 0.5 * (hs - 1)))


def _ratio_enum(anchor, ratios):
    w, h, x_ctr, y_ctr = _whctrs(anchor)
    size = w * h
    size_ratios = size / ratios
    ws = np.round(np.sqrt(size_ratios))
    hs = np.round(ws * ratios)
    return _mkanchors(ws, hs, x_ctr, y_ctr)


def _scale_enum(anchor, scales):
    w, h, x_ctr, y_ctr = _whctrs(anchor)
    ws = w * scales
    hs = h * scales
    return _mkanchors(ws, hs, x_ctr, y_ctr)


def generate_anchors(base_size=16, ratios=(0.5, 1, 2), scales=2 ** np.arange(3, 6)):
    base_anchor = np.array([1, 1, base_size, base_size]) - 1
    ratio_anchors = _ratio_enum(base_anchor, np.array(ratios, dtype=np.float64))
    anchors = np.vstack([_scale_enum(ratio_anchors[i, :], np.array(scales, dtype=np.float64))
                         for i in range(ratio_anchors.shape[0])])
    return anchors


# ----------------------------------------------------------------------------
# Host-side precomputed anchor rows (static anchor math hoisted out of the kernel)
# ----------------------------------------------------------------------------
_ANCHOR_ROWS = 11  # only the rows actually used; second-to-last block dim == full dim is legal
# row layout:
#   0:x1 1:y1 2:x2 3:y2 4:ctr_x 5:ctr_y 6:1/w 7:1/h 8:area 9:zero_area 10:(x1>=0 & y1>=0)


def _round_up(n, m):
    return ((n + m - 1) // m) * m


def _build_anchor_rows(all_anchors, n_pad):
    n = all_anchors.shape[0]
    aa = np.empty((n_pad, 4), dtype=np.float64)
    aa[:n] = all_anchors
    # padded anchors: far outside any image -> inside mask False -> label -1, targets 0
    aa[n:] = np.array([1e6, 1e6, 1e6 + 15.0, 1e6 + 15.0], dtype=np.float64)
    w = aa[:, 2] - aa[:, 0] + 1.0
    h = aa[:, 3] - aa[:, 1] + 1.0
    rows = np.zeros((_ANCHOR_ROWS, n_pad), dtype=np.float32)
    rows[0] = aa[:, 0]
    rows[1] = aa[:, 1]
    rows[2] = aa[:, 2]
    rows[3] = aa[:, 3]
    rows[4] = aa[:, 0] + 0.5 * w            # ex_ctr_x
    rows[5] = aa[:, 1] + 0.5 * h            # ex_ctr_y
    rows[6] = 1.0 / w
    rows[7] = 1.0 / h
    rows[8] = w * h                          # anchor area
    rows[9] = ((w == 1.0) & (h == 1.0)).astype(np.float32)                 # zero-area anchor
    rows[10] = ((aa[:, 0] >= 0.0) & (aa[:, 1] >= 0.0)).astype(np.float32)  # x1>=0 & y1>=0
    return rows


_ANCHOR_CACHE = {}


def _get_anchor_rows(H, W, feat_stride, scales, ratios):
    """Cache the (11, N_pad) anchor-row slab on device, keyed by the static config."""
    key = (int(H), int(W), int(feat_stride),
           tuple(float(s) for s in scales), tuple(float(r) for r in ratios))
    hit = _ANCHOR_CACHE.get(key)
    if hit is not None:
        return hit
    base_anchors = generate_anchors(scales=np.array(scales), ratios=np.array(ratios))
    A = base_anchors.shape[0]
    shift_x = np.arange(0, W) * feat_stride
    shift_y = np.arange(0, H) * feat_stride
    sx, sy = np.meshgrid(shift_x, shift_y)
    shifts = np.vstack((sx.ravel(), sy.ravel(), sx.ravel(), sy.ravel())
                       ).transpose().astype(np.float64)                       # (H*W, 4)
    all_anchors = (base_anchors.reshape(1, A, 4) +
                   shifts.reshape(-1, 1, 4)).reshape(-1, 4)                   # (N, 4)
    N = all_anchors.shape[0]
    n_pad = _round_up(N, 128)                                                 # lane-dense padding
    rows = jax.device_put(jnp.asarray(_build_anchor_rows(all_anchors, n_pad)))
    _ANCHOR_CACHE[key] = (rows, N, A)
    return _ANCHOR_CACHE[key]


# ----------------------------------------------------------------------------
# Pallas kernel: single pass per batch element over the full resident anchor slab
# ----------------------------------------------------------------------------
def _make_kernel(neg_overlap, pos_overlap, clobber_positives, inside_weight, K, n_pad):
    # Plain Python floats/bools only: anything jnp-valued captured by the closure
    # becomes a traced constant and pallas_call rejects it.
    neg_overlap = float(neg_overlap)
    pos_overlap = float(pos_overlap)
    inside_weight = float(inside_weight)
    clobber_positives = bool(clobber_positives)

    def kernel(im_info_ref, anchors_ref, gt_ref, out_ref):
        anc = anchors_ref[...]                       # (11, n_pad), precomputed rows
        ax1 = anc[0:1, :]
        ay1 = anc[1:2, :]
        ax2 = anc[2:3, :]
        ay2 = anc[3:4, :]
        ex_cx = anc[4:5, :]
        ex_cy = anc[5:6, :]
        inv_w = anc[6:7, :]
        inv_h = anc[7:8, :]
        an_area = anc[8:9, :]
        an_zero = anc[9:10, :] > 0.5
        pre_inside = anc[10:11, :] > 0.5

        gtb = gt_ref[0]                              # (K, 5)
        gx1 = gtb[:, 0:1]
        gy1 = gtb[:, 1:2]
        gx2 = gtb[:, 2:3]
        gy2 = gtb[:, 3:4]
        gt_w = gx2 - gx1 + 1.0
        gt_h = gy2 - gy1 + 1.0
        gt_area = gt_w * gt_h                        # (K, 1)
        gt_zero = jnp.logical_and(gt_w == 1.0, gt_h == 1.0)

        # IoU matrix (K, n_pad): gt boxes on sublanes, anchors on lanes.
        iw = jnp.maximum(jnp.minimum(ax2, gx2) - jnp.maximum(ax1, gx1) + 1.0, 0.0)
        ih = jnp.maximum(jnp.minimum(ay2, gy2) - jnp.maximum(ay1, gy1) + 1.0, 0.0)
        inter = iw * ih
        ua = an_area + gt_area - inter
        # Exact divide: label assignment relies on float equality against the
        # per-gt max over this same (single) overlaps tensor.
        overlaps = inter / ua
        overlaps = jnp.where(gt_zero, 0.0, overlaps)
        overlaps = jnp.where(an_zero, -1.0, overlaps)

        # inside-image mask (allowed_border = 0); like the reference, im_info[0]
        # is used for every batch element.
        im_h = jnp.floor(im_info_ref[0, 0])
        im_w = jnp.floor(im_info_ref[0, 1])
        inside = pre_inside & (ax2 < im_w) & (ay2 < im_h)        # (1, n_pad)

        # per-gt max overlap over inside anchors only
        ov_in = jnp.where(inside, overlaps, -jnp.inf)
        gt_max = jnp.max(ov_in, axis=1, keepdims=True)           # (K, 1)
        gt_max = jnp.where(gt_max == 0.0, 1e-5, gt_max)

        # per-anchor max / first-argmax over gt boxes
        max_ov = jnp.max(overlaps, axis=0, keepdims=True)        # (1, n_pad)
        k_iota = jax.lax.broadcasted_iota(jnp.int32, (K, n_pad), 0)
        # For anchors whose overlaps are all zero this still picks gt index 0;
        # that matches the reference (targets only consumed where label == 1).
        argmax_k = jnp.min(jnp.where(overlaps == max_ov, k_iota, K),
                           axis=0, keepdims=True)                # (1, n_pad)

        keep = jnp.sum((overlaps == gt_max).astype(jnp.float32),
                       axis=0, keepdims=True)                    # (1, n_pad)

        labels = jnp.full((1, n_pad), -1.0, dtype=jnp.float32)
        if not clobber_positives:
            labels = jnp.where(max_ov < neg_overlap, 0.0, labels)
        labels = jnp.where(keep > 0.0, 1.0, labels)
        labels = jnp.where(max_ov >= pos_overlap, 1.0, labels)
        if clobber_positives:
            labels = jnp.where(max_ov < neg_overlap, 0.0, labels)
        labels = jnp.where(inside, labels, -1.0)                 # _unmap(..., fill=-1)

        # matched-gt gather: exact one-hot multiply + sublane reduction (VPU/XLU).
        oh = (k_iota == argmax_k).astype(jnp.float32)            # (K, n_pad)
        sx1 = jnp.sum(oh * gx1, axis=0, keepdims=True)
        sy1 = jnp.sum(oh * gy1, axis=0, keepdims=True)
        sx2 = jnp.sum(oh * gx2, axis=0, keepdims=True)
        sy2 = jnp.sum(oh * gy2, axis=0, keepdims=True)

        # bbox_transform_batch (ex_rois 2-D branch), using precomputed
        # ex centers / reciprocal widths.
        g_w = sx2 - sx1 + 1.0
        g_h = sy2 - sy1 + 1.0
        g_cx = sx1 + 0.5 * g_w
        g_cy = sy1 + 0.5 * g_h
        dx = (g_cx - ex_cx) * inv_w
        dy = (g_cy - ex_cy) * inv_h
        dw = jnp.log(g_w * inv_w)
        dh = jnp.log(g_h * inv_h)
        tgt = jnp.concatenate([dx, dy, dw, dh], axis=0)          # (4, n_pad)
        tgt = jnp.where(inside, tgt, 0.0)                        # _unmap(..., fill=0)

        pos = labels == 1.0
        row_biw = jnp.where(pos, inside_weight, 0.0)
        row_valid = (labels >= 0.0).astype(jnp.float32)
        row_zero = jnp.zeros((1, n_pad), jnp.float32)

        # single 8-sublane, lane-dense combined store (one write DMA per step)
        out_ref[0] = jnp.concatenate(
            [tgt, labels, row_biw, row_valid, row_zero], axis=0)  # (8, n_pad)

    return kernel


def anchor_target_pallas(anchors_rows, gt_boxes, im_info, cfg):
    """anchors_rows: (11, N_pad) f32; gt_boxes: (B, K, 5); im_info: (B, 3)."""
    B, K, _ = gt_boxes.shape
    R, n_pad = anchors_rows.shape
    kernel = _make_kernel(cfg["RPN_NEGATIVE_OVERLAP"],
                          cfg["RPN_POSITIVE_OVERLAP"],
                          cfg["RPN_CLOBBER_POSITIVES"],
                          cfg["RPN_BBOX_INSIDE_WEIGHTS"][0],
                          K, n_pad)
    # VMEM budget: anchors slab + output block (double-buffered) + (K, n_pad)
    # intermediates; clamp to <= 48 MiB so the plan also fits v7x's 64 MiB VMEM.
    est = 4 * n_pad * (2 * R + 2 * 8 + 8 * max(K, 8) + 32) + (2 << 20)
    vmem_limit = int(min(max(est, 8 << 20), 48 << 20))

    out = pl.pallas_call(
        kernel,
        out_shape=jax.ShapeDtypeStruct((B, 8, n_pad), jnp.float32),
        grid_spec=pltpu.PrefetchScalarGridSpec(
            num_scalar_prefetch=0,
            grid=(B,),                                            # single pass per batch
            in_specs=[
                pl.BlockSpec(memory_space=pltpu.MemorySpace.SMEM),        # im_info (B, 3)
                pl.BlockSpec((R, n_pad), lambda b: (0, 0)),               # full anchor slab, fetched once
                pl.BlockSpec((1, K, 5), lambda b: (b, 0, 0)),             # gt boxes
            ],
            out_specs=pl.BlockSpec((1, 8, n_pad), lambda b: (b, 0, 0)),
        ),
        compiler_params=pltpu.CompilerParams(
            dimension_semantics=("parallel",),
            vmem_limit_bytes=vmem_limit),
    )(im_info, anchors_rows, gt_boxes)
    return out


# ----------------------------------------------------------------------------
# Full forward (glue: anchor grid, reshapes, weights)
# ----------------------------------------------------------------------------
def anchor_target_layer_forward(rpn_cls_score, gt_boxes, im_info, num_boxes,
                                *, feat_stride, scales, ratios, cfg):
    del num_boxes  # unused by the original forward as well
    B, K = int(gt_boxes.shape[0]), int(gt_boxes.shape[1])
    H, W = int(rpn_cls_score.shape[2]), int(rpn_cls_score.shape[3])

    anchors_rows, N, A = _get_anchor_rows(H, W, feat_stride, scales, ratios)

    gt_boxes = gt_boxes.astype(jnp.float32)
    out = anchor_target_pallas(anchors_rows, gt_boxes, im_info.astype(jnp.float32), cfg)

    out = out[:, :, :N]                                                       # drop pad lanes
    bbox_targets = jnp.transpose(out[:, 0:4, :], (0, 2, 1))                   # (B, N, 4)
    labels = out[:, 4, :]                                                     # (B, N)
    biw = out[:, 5, :]                                                        # (B, N)
    valid = out[:, 6, :]                                                      # labels >= 0

    # TODO(synk): the original randomly disables excess fg/bg anchors via
    # np.random.permutation (non-deterministic, not expressible exactly); with
    # the demo config sum_fg <= num_fg and sum_bg <= num_bg, so those branches
    # are no-ops and the deterministic path below is exact.

    if cfg["RPN_POSITIVE_WEIGHT"] < 0:
        # Reproduces the original exactly, including its use of the *last* batch
        # element (leaked loop variable `i`) for the normalizer.
        num_examples = jnp.sum(valid[B - 1])
        positive_weights = 1.0 / num_examples
    else:
        raise NotImplementedError(
            "RPN_POSITIVE_WEIGHT >= 0 path references undefined vars in the original.")
    # positive_weights == negative_weights on this path, so a single scale works.
    bbox_outside_w = valid * positive_weights

    labels_out = labels.reshape(B, H, W, A).transpose(0, 3, 1, 2).reshape(B, 1, A * H, W)
    bbox_targets_out = bbox_targets.reshape(B, H, W, A * 4).transpose(0, 3, 1, 2)
    biw_out = jnp.broadcast_to(biw[:, :, None], (B, N, 4)
                               ).reshape(B, H, W, 4 * A).transpose(0, 3, 1, 2)
    bow_out = jnp.broadcast_to(bbox_outside_w[:, :, None], (B, N, 4)
                               ).reshape(B, H, W, 4 * A).transpose(0, 3, 1, 2)
    return [labels_out, bbox_targets_out, biw_out, bow_out]


# ----------------------------------------------------------------------------
# Demo
# ----------------------------------------------------------------------------
if __name__ == "__main__":
    cfg = dict(
        RPN_CLOBBER_POSITIVES=False,
        RPN_NEGATIVE_OVERLAP=0.3,
        RPN_POSITIVE_OVERLAP=0.7,
        RPN_FG_FRACTION=0.5,
        RPN_BATCHSIZE=256,
        RPN_BBOX_INSIDE_WEIGHTS=(1.0, 1.0, 1.0, 1.0),
        RPN_POSITIVE_WEIGHT=-1.0,
    )
    feat_stride = 16
    scales = [2, 4, 8]
    ratios = [0.5, 1, 2]
    B, H, W = 2, 8, 8
    A = 9
    Kg = 8

    key = jax.random.PRNGKey(0)
    k1, k2 = jax.random.split(key)

    rpn_cls_score = jnp.zeros((B, 2 * A, H, W), jnp.float32)   # only H, W are used
    x1y1 = jax.random.uniform(k1, (B, Kg, 2), minval=0.0, maxval=60.0)
    wh = jax.random.uniform(k2, (B, Kg, 2), minval=16.0, maxval=60.0)
    x2y2 = jnp.minimum(x1y1 + wh, 127.0)
    cls = jnp.ones((B, Kg, 1), jnp.float32)
    gt_boxes = jnp.concatenate(
        [x1y1[..., 0:1], x1y1[..., 1:2], x2y2[..., 0:1], x2y2[..., 1:2], cls], axis=-1)
    valid_rows = (jnp.arange(Kg) < 5).astype(jnp.float32)[None, :, None]
    gt_boxes = gt_boxes * valid_rows                            # zero-padded gt slots
    im_info = jnp.array([[128.0, 128.0, 1.0]] * B, jnp.float32)
    num_boxes = jnp.array([5, 5], jnp.int32)

    outputs = anchor_target_layer_forward(
        rpn_cls_score, gt_boxes, im_info, num_boxes,
        feat_stride=feat_stride, scales=scales, ratios=ratios, cfg=cfg)
    outputs = [jax.block_until_ready(o) for o in outputs]

    expected_shapes = [(B, 1, A * H, W), (B, 4 * A, H, W), (B, 4 * A, H, W), (B, 4 * A, H, W)]
    assert [tuple(o.shape) for o in outputs] == expected_shapes, \
        [tuple(o.shape) for o in outputs]
    assert all(bool(jnp.all(jnp.isfinite(o))) for o in outputs)
    print("KERNEL_OK")
</pallas_src>

<mosaic_0001>
module attributes {stable_mosaic.version = 11 : i64} {
  func.func @kernel(%arg0: i32, %arg1: memref<2x3xf32, #tpu.memory_space<smem>>, %arg2: memref<11x640xf32, #tpu.memory_space<vmem>>, %arg3: memref<1x8x5xf32, #tpu.memory_space<vmem>>, %arg4: memref<1x8x640xf32, #tpu.memory_space<vmem>>) attributes {dimension_semantics = [#tpu.dimension_semantics<parallel>], iteration_bounds = array<i64: 2>, scalar_prefetch = 0 : i64, scratch_operands = 0 : i64, tpu.core_type = #tpu.core_type<tc>, window_params = [{transform_indices = @transform_0, window_bounds = array<i64: 2, 3>}, {pipeline_mode = #tpu.pipeline_mode<synchronous>, transform_indices = @transform_1, window_bounds = array<i64: 11, 640>}, {transform_indices = @transform_2, window_bounds = array<i64: 1, 8, 5>}, {transform_indices = @transform_3, window_bounds = array<i64: 1, 8, 640>}]} {
    %c0 = arith.constant 0 : index
    %c0_0 = arith.constant 0 : index
    %0 = vector.load %arg2[%c0, %c0_0] : memref<11x640xf32, #tpu.memory_space<vmem>>, vector<11x640xf32>
    %1 = vector.extract_strided_slice %0 {offsets = [0, 0], sizes = [1, 640], strides = [1, 1]} : vector<11x640xf32> to vector<1x640xf32>
    %2 = vector.extract_strided_slice %0 {offsets = [1, 0], sizes = [1, 640], strides = [1, 1]} : vector<11x640xf32> to vector<1x640xf32>
    %3 = vector.extract_strided_slice %0 {offsets = [2, 0], sizes = [1, 640], strides = [1, 1]} : vector<11x640xf32> to vector<1x640xf32>
    %4 = vector.extract_strided_slice %0 {offsets = [3, 0], sizes = [1, 640], strides = [1, 1]} : vector<11x640xf32> to vector<1x640xf32>
    %5 = vector.extract_strided_slice %0 {offsets = [4, 0], sizes = [1, 640], strides = [1, 1]} : vector<11x640xf32> to vector<1x640xf32>
    %6 = vector.extract_strided_slice %0 {offsets = [5, 0], sizes = [1, 640], strides = [1, 1]} : vector<11x640xf32> to vector<1x640xf32>
    %7 = vector.extract_strided_slice %0 {offsets = [6, 0], sizes = [1, 640], strides = [1, 1]} : vector<11x640xf32> to vector<1x640xf32>
    %8 = vector.extract_strided_slice %0 {offsets = [7, 0], sizes = [1, 640], strides = [1, 1]} : vector<11x640xf32> to vector<1x640xf32>
    %9 = vector.extract_strided_slice %0 {offsets = [8, 0], sizes = [1, 640], strides = [1, 1]} : vector<11x640xf32> to vector<1x640xf32>
    %10 = vector.extract_strided_slice %0 {offsets = [9, 0], sizes = [1, 640], strides = [1, 1]} : vector<11x640xf32> to vector<1x640xf32>
    %cst = arith.constant 5.000000e-01 : f32
    %11 = vector.broadcast %cst : f32 to vector<1x640xf32>
    %12 = arith.cmpf ogt, %10, %11 : vector<1x640xf32>
    %13 = vector.extract_strided_slice %0 {offsets = [10, 0], sizes = [1, 640], strides = [1, 1]} : vector<11x640xf32> to vector<1x640xf32>
    %cst_1 = arith.constant 5.000000e-01 : f32
    %14 = vector.broadcast %cst_1 : f32 to vector<1x640xf32>
    %15 = arith.cmpf ogt, %13, %14 : vector<1x640xf32>
    %c0_2 = arith.constant 0 : index
    %c0_3 = arith.constant 0 : index
    %c0_4 = arith.constant 0 : index
    %16 = vector.load %arg3[%c0_2, %c0_3, %c0_4] : memref<1x8x5xf32, #tpu.memory_space<vmem>>, vector<1x8x5xf32>
    %17 = vector.shape_cast %16 : vector<1x8x5xf32> to vector<8x5xf32>
    %18 = vector.extract_strided_slice %17 {offsets = [0, 0], sizes = [8, 1], strides = [1, 1]} : vector<8x5xf32> to vector<8x1xf32>
    %19 = vector.extract_strided_slice %17 {offsets = [0, 1], sizes = [8, 1], strides = [1, 1]} : vector<8x5xf32> to vector<8x1xf32>
    %20 = vector.extract_strided_slice %17 {offsets = [0, 2], sizes = [8, 1], strides = [1, 1]} : vector<8x5xf32> to vector<8x1xf32>
    %21 = vector.extract_strided_slice %17 {offsets = [0, 3], sizes = [8, 1], strides = [1, 1]} : vector<8x5xf32> to vector<8x1xf32>
    %22 = arith.subf %20, %18 : vector<8x1xf32>
    %cst_5 = arith.constant 1.000000e+00 : f32
    %23 = vector.broadcast %cst_5 : f32 to vector<8x1xf32>
    %24 = arith.addf %22, %23 : vector<8x1xf32>
    %25 = arith.subf %21, %19 : vector<8x1xf32>
    %cst_6 = arith.constant 1.000000e+00 : f32
    %26 = vector.broadcast %cst_6 : f32 to vector<8x1xf32>
    %27 = arith.addf %25, %26 : vector<8x1xf32>
    %28 = arith.mulf %24, %27 : vector<8x1xf32>
    %cst_7 = arith.constant 1.000000e+00 : f32
    %29 = vector.broadcast %cst_7 : f32 to vector<8x1xf32>
    %30 = arith.cmpf oeq, %24, %29 : vector<8x1xf32>
    %cst_8 = arith.constant 1.000000e+00 : f32
    %31 = vector.broadcast %cst_8 : f32 to vector<8x1xf32>
    %32 = arith.cmpf oeq, %27, %31 : vector<8x1xf32>
    %33 = arith.andi %30, %32 : vector<8x1xi1>
    %34 = vector.broadcast %3 : vector<1x640xf32> to vector<8x640xf32>
    %35 = vector.broadcast %20 : vector<8x1xf32> to vector<8x640xf32>
    %36 = arith.minimumf %34, %35 : vector<8x640xf32>
    %37 = vector.broadcast %1 : vector<1x640xf32> to vector<8x640xf32>
    %38 = vector.broadcast %18 : vector<8x1xf32> to vector<8x640xf32>
    %39 = arith.maximumf %37, %38 : vector<8x640xf32>
    %40 = arith.subf %36, %39 : vector<8x640xf32>
    %cst_9 = arith.constant 1.000000e+00 : f32
    %41 = vector.broadcast %cst_9 : f32 to vector<8x640xf32>
    %42 = arith.addf %40, %41 : vector<8x640xf32>
    %cst_10 = arith.constant 0.000000e+00 : f32
    %43 = vector.broadcast %cst_10 : f32 to vector<8x640xf32>
    %44 = arith.maximumf %42, %43 : vector<8x640xf32>
    %45 = vector.broadcast %4 : vector<1x640xf32> to vector<8x640xf32>
    %46 = vector.broadcast %21 : vector<8x1xf32> to vector<8x640xf32>
    %47 = arith.minimumf %45, %46 : vector<8x640xf32>
    %48 = vector.broadcast %2 : vector<1x640xf32> to vector<8x640xf32>
    %49 = vector.broadcast %19 : vector<8x1xf32> to vector<8x640xf32>
    %50 = arith.maximumf %48, %49 : vector<8x640xf32>
    %51 = arith.subf %47, %50 : vector<8x640xf32>
    %cst_11 = arith.constant 1.000000e+00 : f32
    %52 = vector.broadcast %cst_11 : f32 to vector<8x640xf32>
    %53 = arith.addf %51, %52 : vector<8x640xf32>
    %cst_12 = arith.constant 0.000000e+00 : f32
    %54 = vector.broadcast %cst_12 : f32 to vector<8x640xf32>
    %55 = arith.maximumf %53, %54 : vector<8x640xf32>
    %56 = arith.mulf %44, %55 : vector<8x640xf32>
    %57 = vector.broadcast %9 : vector<1x640xf32> to vector<8x640xf32>
    %58 = vector.broadcast %28 : vector<8x1xf32> to vector<8x640xf32>
    %59 = arith.addf %57, %58 : vector<8x640xf32>
    %60 = arith.subf %59, %56 : vector<8x640xf32>
    %61 = arith.divf %56, %60 : vector<8x640xf32>
    %cst_13 = arith.constant 0.000000e+00 : f32
    %62 = vector.shape_cast %33 : vector<8x1xi1> to vector<8x1xi1>
    %63 = vector.broadcast %62 : vector<8x1xi1> to vector<8x640xi1>
    %64 = vector.broadcast %cst_13 : f32 to vector<8x640xf32>
    %65 = arith.select %63, %64, %61 : vector<8x640xi1>, vector<8x640xf32>
    %cst_14 = arith.constant -1.000000e+00 : f32
    %66 = vector.shape_cast %12 : vector<1x640xi1> to vector<1x640xi1>
    %67 = vector.broadcast %66 : vector<1x640xi1> to vector<8x640xi1>
    %68 = vector.broadcast %cst_14 : f32 to vector<8x640xf32>
    %69 = arith.select %67, %68, %65 : vector<8x640xi1>, vector<8x640xf32>
    %c0_15 = arith.constant 0 : index
    %c0_16 = arith.constant 0 : index
    %70 = memref.load %arg1[%c0_15, %c0_16] : memref<2x3xf32, #tpu.memory_space<smem>>
    %71 = math.floor %70 : f32
    %c0_17 = arith.constant 0 : index
    %c1 = arith.constant 1 : index
    %72 = memref.load %arg1[%c0_17, %c1] : memref<2x3xf32, #tpu.memory_space<smem>>
    %73 = math.floor %72 : f32
    %74 = vector.broadcast %73 : f32 to vector<1x640xf32>
    %75 = arith.cmpf olt, %3, %74 : vector<1x640xf32>
    %76 = arith.andi %15, %75 : vector<1x640xi1>
    %77 = vector.broadcast %71 : f32 to vector<1x640xf32>
    %78 = arith.cmpf olt, %4, %77 : vector<1x640xf32>
    %79 = arith.andi %76, %78 : vector<1x640xi1>
    %cst_18 = arith.constant 0xFF800000 : f32
    %80 = vector.shape_cast %79 : vector<1x640xi1> to vector<1x640xi1>
    %81 = vector.broadcast %80 : vector<1x640xi1> to vector<8x640xi1>
    %82 = vector.broadcast %cst_18 : f32 to vector<8x640xf32>
    %83 = arith.select %81, %69, %82 : vector<8x640xi1>, vector<8x640xf32>
    %cst_19 = arith.constant dense<0xFF800000> : vector<8xf32>
    %84 = vector.multi_reduction <maximumf>, %83, %cst_19 [1] : vector<8x640xf32> to vector<8xf32>
    %85 = vector.shape_cast %84 : vector<8xf32> to vector<8x1xf32>
    %cst_20 = arith.constant 0.000000e+00 : f32
    %86 = vector.broadcast %cst_20 : f32 to vector<8x1xf32>
    %87 = arith.cmpf oeq, %85, %86 : vector<8x1xf32>
    %cst_21 = arith.constant 9.99999974E-6 : f32
    %88 = vector.broadcast %cst_21 : f32 to vector<8x1xf32>
    %89 = arith.select %87, %88, %85 : vector<8x1xi1>, vector<8x1xf32>
    %cst_22 = arith.constant dense<0xFF800000> : vector<640xf32>
    %90 = vector.multi_reduction <maximumf>, %69, %cst_22 [0] : vector<8x640xf32> to vector<640xf32>
    %91 = vector.shape_cast %90 : vector<640xf32> to vector<1x640xf32>
    %92 = tpu.iota {dimensions = array<i32: 0>} : vector<8x640xi32>
    %93 = vector.broadcast %91 : vector<1x640xf32> to vector<8x640xf32>
    %94 = arith.cmpf oeq, %69, %93 : vector<8x640xf32>
    %c8_i32 = arith.constant 8 : i32
    %95 = vector.broadcast %c8_i32 : i32 to vector<8x640xi32>
    %96 = arith.select %94, %92, %95 : vector<8x640xi1>, vector<8x640xi32>
    %cst_23 = arith.constant dense<2147483647> : vector<640xi32>
    %97 = vector.multi_reduction <minsi>, %96, %cst_23 [0] : vector<8x640xi32> to vector<640xi32>
    %98 = vector.shape_cast %97 : vector<640xi32> to vector<1x640xi32>
    %99 = vector.broadcast %89 : vector<8x1xf32> to vector<8x640xf32>
    %100 = arith.cmpf oeq, %69, %99 : vector<8x640xf32>
    %101 = arith.extui %100 : vector<8x640xi1> to vector<8x640xi32>
    %102 = arith.sitofp %101 : vector<8x640xi32> to vector<8x640xf32>
    %cst_24 = arith.constant dense<0.000000e+00> : vector<640xf32>
    %103 = vector.multi_reduction <add>, %102, %cst_24 [0] : vector<8x640xf32> to vector<640xf32>
    %104 = vector.shape_cast %103 : vector<640xf32> to vector<1x640xf32>
    %cst_25 = arith.constant -1.000000e+00 : f32
    %105 = vector.broadcast %cst_25 : f32 to vector<1x640xf32>
    %cst_26 = arith.constant 3.000000e-01 : f32
    %106 = vector.broadcast %cst_26 : f32 to vector<1x640xf32>
    %107 = arith.cmpf olt, %91, %106 : vector<1x640xf32>
    %cst_27 = arith.constant 0.000000e+00 : f32
    %108 = vector.broadcast %cst_27 : f32 to vector<1x640xf32>
    %109 = arith.select %107, %108, %105 : vector<1x640xi1>, vector<1x640xf32>
    %cst_28 = arith.constant 0.000000e+00 : f32
    %110 = vector.broadcast %cst_28 : f32 to vector<1x640xf32>
    %111 = arith.cmpf ogt, %104, %110 : vector<1x640xf32>
    %cst_29 = arith.constant 1.000000e+00 : f32
    %112 = vector.broadcast %cst_29 : f32 to vector<1x640xf32>
    %113 = arith.select %111, %112, %109 : vector<1x640xi1>, vector<1x640xf32>
    %cst_30 = arith.constant 0.699999988 : f32
    %114 = vector.broadcast %cst_30 : f32 to vector<1x640xf32>
    %115 = arith.cmpf oge, %91, %114 : vector<1x640xf32>
    %cst_31 = arith.constant 1.000000e+00 : f32
    %116 = vector.broadcast %cst_31 : f32 to vector<1x640xf32>
    %117 = arith.select %115, %116, %113 : vector<1x640xi1>, vector<1x640xf32>
    %cst_32 = arith.constant -1.000000e+00 : f32
    %118 = vector.broadcast %cst_32 : f32 to vector<1x640xf32>
    %119 = arith.select %79, %117, %118 : vector<1x640xi1>, vector<1x640xf32>
    %120 = vector.broadcast %98 : vector<1x640xi32> to vector<8x640xi32>
    %121 = arith.cmpi eq, %92, %120 : vector<8x640xi32>
    %122 = arith.extui %121 : vector<8x640xi1> to vector<8x640xi32>
    %123 = arith.sitofp %122 : vector<8x640xi32> to vector<8x640xf32>
    %124 = vector.broadcast %18 : vector<8x1xf32> to vector<8x640xf32>
    %125 = arith.mulf %123, %124 : vector<8x640xf32>
    %cst_33 = arith.constant dense<0.000000e+00> : vector<640xf32>
    %126 = vector.multi_reduction <add>, %125, %cst_33 [0] : vector<8x640xf32> to vector<640xf32>
    %127 = vector.shape_cast %126 : vector<640xf32> to vector<1x640xf32>
    %128 = vector.broadcast %19 : vector<8x1xf32> to vector<8x640xf32>
    %129 = arith.mulf %123, %128 : vector<8x640xf32>
    %cst_34 = arith.constant dense<0.000000e+00> : vector<640xf32>
    %130 = vector.multi_reduction <add>, %129, %cst_34 [0] : vector<8x640xf32> to vector<640xf32>
    %131 = vector.shape_cast %130 : vector<640xf32> to vector<1x640xf32>
    %132 = vector.broadcast %20 : vector<8x1xf32> to vector<8x640xf32>
    %133 = arith.mulf %123, %132 : vector<8x640xf32>
    %cst_35 = arith.constant dense<0.000000e+00> : vector<640xf32>
    %134 = vector.multi_reduction <add>, %133, %cst_35 [0] : vector<8x640xf32> to vector<640xf32>
    %135 = vector.shape_cast %134 : vector<640xf32> to vector<1x640xf32>
    %136 = vector.broadcast %21 : vector<8x1xf32> to vector<8x640xf32>
    %137 = arith.mulf %123, %136 : vector<8x640xf32>
    %cst_36 = arith.constant dense<0.000000e+00> : vector<640xf32>
    %138 = vector.multi_reduction <add>, %137, %cst_36 [0] : vector<8x640xf32> to vector<640xf32>
    %139 = vector.shape_cast %138 : vector<640xf32> to vector<1x640xf32>
    %140 = arith.subf %135, %127 : vector<1x640xf32>
    %cst_37 = arith.constant 1.000000e+00 : f32
    %141 = vector.broadcast %cst_37 : f32 to vector<1x640xf32>
    %142 = arith.addf %140, %141 : vector<1x640xf32>
    %143 = arith.subf %139, %131 : vector<1x640xf32>
    %cst_38 = arith.constant 1.000000e+00 : f32
    %144 = vector.broadcast %cst_38 : f32 to vector<1x640xf32>
    %145 = arith.addf %143, %144 : vector<1x640xf32>
    %cst_39 = arith.constant 5.000000e-01 : f32
    %146 = vector.broadcast %cst_39 : f32 to vector<1x640xf32>
    %147 = arith.mulf %146, %142 : vector<1x640xf32>
    %148 = arith.addf %127, %147 : vector<1x640xf32>
    %cst_40 = arith.constant 5.000000e-01 : f32
    %149 = vector.broadcast %cst_40 : f32 to vector<1x640xf32>
    %150 = arith.mulf %149, %145 : vector<1x640xf32>
    %151 = arith.addf %131, %150 : vector<1x640xf32>
    %152 = arith.subf %148, %5 : vector<1x640xf32>
    %153 = arith.mulf %152, %7 : vector<1x640xf32>
    %154 = arith.subf %151, %6 : vector<1x640xf32>
    %155 = arith.mulf %154, %8 : vector<1x640xf32>
    %156 = arith.mulf %142, %7 : vector<1x640xf32>
    %157 = math.log %156 : vector<1x640xf32>
    %158 = arith.mulf %145, %8 : vector<1x640xf32>
    %159 = math.log %158 : vector<1x640xf32>
    %160 = tpu.concatenate %153, %155, %157, %159 in 0 : vector<1x640xf32>, vector<1x640xf32>, vector<1x640xf32>, vector<1x640xf32> -> vector<4x640xf32>
    %cst_41 = arith.constant 0.000000e+00 : f32
    %161 = vector.shape_cast %79 : vector<1x640xi1> to vector<1x640xi1>
    %162 = vector.broadcast %161 : vector<1x640xi1> to vector<4x640xi1>
    %163 = vector.broadcast %cst_41 : f32 to vector<4x640xf32>
    %164 = arith.select %162, %160, %163 : vector<4x640xi1>, vector<4x640xf32>
    %cst_42 = arith.constant 1.000000e+00 : f32
    %165 = vector.broadcast %cst_42 : f32 to vector<1x640xf32>
    %166 = arith.cmpf oeq, %119, %165 : vector<1x640xf32>
    %cst_43 = arith.constant 1.000000e+00 : f32
    %cst_44 = arith.constant 0.000000e+00 : f32
    %167 = vector.broadcast %cst_43 : f32 to vector<1x640xf32>
    %168 = vector.broadcast %cst_44 : f32 to vector<1x640xf32>
    %169 = arith.select %166, %167, %168 : vector<1x640xi1>, vector<1x640xf32>
    %cst_45 = arith.constant 0.000000e+00 : f32
    %170 = vector.broadcast %cst_45 : f32 to vector<1x640xf32>
    %171 = arith.cmpf oge, %119, %170 : vector<1x640xf32>
    %172 = arith.extui %171 : vector<1x640xi1> to vector<1x640xi32>
    %173 = arith.sitofp %172 : vector<1x640xi32> to vector<1x640xf32>
    %cst_46 = arith.constant 0.000000e+00 : f32
    %174 = vector.broadcast %cst_46 : f32 to vector<1x640xf32>
    %175 = tpu.concatenate %164, %119, %169, %173, %174 in 0 : vector<4x640xf32>, vector<1x640xf32>, vector<1x640xf32>, vector<1x640xf32>, vector<1x640xf32> -> vector<8x640xf32>
    %c0_47 = arith.constant 0 : index
    %c0_48 = arith.constant 0 : index
    %c0_49 = arith.constant 0 : index
    %176 = vector.load %arg4[%c0_47, %c0_48, %c0_49] : memref<1x8x640xf32, #tpu.memory_space<vmem>>, vector<1x8x640xf32>
    %177 = vector.shape_cast %176 : vector<1x8x640xf32> to vector<8x640xf32>
    %178 = vector.shape_cast %175 : vector<8x640xf32> to vector<1x8x640xf32>
    tpu.vector_store %arg4[%c0_47, %c0_48, %c0_49], %178 {strides = array<i32>} : memref<1x8x640xf32, #tpu.memory_space<vmem>>, vector<1x8x640xf32>,
    return
  }
  func.func @transform_0(%arg0: i32) -> (i32, i32) {
    %c0_i32 = arith.constant 0 : i32
    %c0_i32_0 = arith.constant 0 : i32
    %c0_i32_1 = arith.constant 0 : i32
    return %c0_i32, %c0_i32_0 : i32, i32
  }
  func.func @transform_1(%arg0: i32) -> (i32, i32) {
    %c0_i32 = arith.constant 0 : i32
    %c0_i32_0 = arith.constant 0 : i32
    %c0_i32_1 = arith.constant 0 : i32
    return %c0_i32, %c0_i32_0 : i32, i32
  }
  func.func @transform_2(%arg0: i32) -> (i32, i32, i32) {
    %c0_i32 = arith.constant 0 : i32
    %c0_i32_0 = arith.constant 0 : i32
    %c0_i32_1 = arith.constant 0 : i32
    return %arg0, %c0_i32, %c0_i32_0 : i32, i32, i32
  }
  func.func @transform_3(%arg0: i32) -> (i32, i32, i32) {
    %c0_i32 = arith.constant 0 : i32
    %c0_i32_0 = arith.constant 0 : i32
    %c0_i32_1 = arith.constant 0 : i32
    return %arg0, %c0_i32, %c0_i32_0 : i32, i32, i32
  }
}

</mosaic_0001>

<bundles_post_ra>
// kernel: tpu_custom_call.1
= control target key start
LH: loop header
LB: loop body
LE: loop exit
PB: predicated region body
PF: predicated region fallthrough
CT: control target
= control target key end

     0   :  { %8 = vsyncpa [#allocation5], 0  ;;  %s2327_s0 = inlined_call_operand.vmem [shape: f32[2,3], index: 0, kind: input, shape index: {}]   ;;  %s2328_s1 = inlined_call_operand.hbm [shape: f32[11,640], index: 1, kind: input, shape index: {}]   ;;  %s2329_s2 = inlined_call_operand.vmem [shape: f32[2,8,5], index: 2, kind: input, shape index: {}]   ;;  %s2330_s3 = inlined_call_operand.hbm [shape: f32[2,8,640], index: 3, kind: output, shape index: {}]  }
   0x1   :  { %9 = vsyncpa [#allocation3], 0 }
   0x2   :  { %10 = vsyncpa [#allocation4], 0 }
   0x3   :  { %12 = vsyncpa [#allocation4 + $0x1], 0  ;;  %s1545_s12 = smov 0   ;;  %s1547_s13 = smov 0  }
   0x4   :  { %s1549_s14 = smov 0   ;;  %s1551_s15 = smov 0  }
   0x5 LB: > { %s1566_s16 = sadd.s32 4294967295, %s1510_s15   ;;  %s1260_s17 = sadd.s32 4294967294, %s1510_s15   ;;  %s1510_s15 = sphi %s1551_s15, %s2480_s15   ;;  %s1506_s14 = sphi %s1549_s14, %s2479_s14   ;;  %s1502_s13 = sphi %s1547_s13, %s2478_s13   ;;  %s1498_s12 = sphi %s1545_s12, %s2477_s12  }
   0x6   : > { %s1570_s18 = sadd.s32 1, %s1510_s15   ;;  %s93_s19 = sadd.s32 1, %s1506_s14 }
   0x7   : > { %s90_s20 = ssub.s32 %s1510_s15, %s1570_s18  ;;  %p103_p0 = scmp.ne.s32.totalorder %s1506_s14, %s1502_s13 }
   0x8   : > { %p91_p1 = scmp.eq.s32.totalorder %s90_s20, 0  ;;  %p104_p2 = scmp.eq.s32.totalorder %s1566_s16, 1 }
   0x9   : > { %p109_p3 = scmp.ne.s32.totalorder %s1502_s13, %s1498_s12  ;;  %p110_p4 = scmp.eq.s32.totalorder %s1260_s17, 1 }
   0xa   : > { %s1581_s21 = scalar_select %p91_p1, %s1506_s14, %s93_s19  }
   0xb   : > { %p1583_p5 = por %p104_p2, %p103_p0  ;;  %p1587_p6 = por %p110_p4, %p109_p3 }
   0xc   : > { %p1261_p7 = scmp.ge.s32.totalorder %s1510_s15, 1  ;;  %p117_p8 = scmp.lt.s32.totalorder %s1510_s15, 3 }
   0xd   : > { %s2373_s22 = scalar_select %p1583_p5, 1, 0 }
   0xe   : > { %s2374_s23 = scalar_select %p1587_p6, 1, 0 }
   0xf   : > { %p2331_p9 = scmp.eq.s32.totalorder %s1566_s16, 0  ;;  %p1594_p10 = pnand %p1261_p7, %p117_p8 }
  0x10   : > { %s130_s27 = sshll.u32 %s2327_s0, 4  ;;  %s1512_s28 = smov [#allocation6]   ;;  %s131_s27 = int_to_ptr.vmem [resolvable:$true] %s130_s27 }
  0x11   : > { %s2375_s24 = scalar_select %p1594_p10, 1, 0 }
  0x12   : > { %p1300_p11 = pneg %p1594_p10  ;;  %s140_s29 = sshll.u32 %s1512_s28, 4  ;;  %s141_s29 = int_to_ptr.vmem [resolvable:$true] %s140_s29 }
  0x13   : > { %s1401_s4 = scalar_lea.vmem %s131_s27, 32  ;;  %p1409_p3 = scmp.lt.s32.totalorder %s131_s27, %s131_s27 }
  0x14   : > { %p1605_p12 = pnand %p2331_p9, %p1300_p11  ;;  %p1402_p13 = scmp.ne.s32.totalorder %s131_s27, %s1401_s4 }
  0x15   : > { %p1410_p4 = scmp.lt.s32.totalorder %s1401_s4, %s1401_s4 }
  0x16   : > { %p1403_p0 = pneg %p1605_p12 }
  0x17   : > { %p1411_p7 = por %p1410_p4, %p1409_p3 }
  0x18   : > { %p1404_p1 = pnand %p1403_p0, %p1402_p13 }
  0x1a   : > { %p1405_p2 = pneg %p1404_p1 }
  0x1c   : > { %p1412_p8 = pnand %p1411_p7, %p1405_p2 }
  0x1e   : > { %1415 = shalt.err (!%p1412_p8)
}
  0x1f   : > { %s1513_s5 = smov [#allocation2]   ;;  %s1427_s6 = scalar_lea.vmem %s141_s29, 1280 }
  0x20   : > { %1303 = dma.vmem_to_smem (!%p1605_p12), %s131_s27, 32, %s1513_s5, [#allocation5]  }
  0x21   : > { %p1428_p11 = scmp.ne.s32.totalorder %s141_s29, %s1427_s6  ;;  %p1435_p5 = scmp.lt.s32.totalorder %s141_s29, %s141_s29 }
  0x22   : > { %p1436_p10 = scmp.lt.s32.totalorder %s1427_s6, %s1427_s6 }
  0x23   : > { %p1430_p9 = pnand %p1428_p11, %p1403_p0 }
  0x24   : > { %p1437_p13 = por %p1436_p10, %p1435_p5 }
  0x25   : > { %p1431_p6 = pneg %p1430_p9 }
  0x27   : > { %p1438_p1 = pnand %p1437_p13, %p1431_p6 }
  0x29   : > { %1441 = shalt.err (!%p1438_p1)
}
  0x2a   : > { %s1514_s7 = smov 640   ;;  %s1515_s8 = smov 40  }
  0x2b   : > { %1306 = dma.hbm_to_vmem [thread:$0]  (!%p1605_p12), %s2328_s1, 1280, %s141_s29, [#allocation3], %s1514_s7, %s1514_s7, %s1515_s8  }
  0x2c   : > { %p2377_p2 = scmp.ne.s32.totalorder %s2375_s24, 0 }
  0x2e   : > { %163 = sbr.rel (%p2377_p2) target bundleno = 653 (0x28d), region = 32 }
  0x33   : > { %p2378_p3 = scmp.eq.s32.totalorder %s1566_s16, 0 }
  0x35   : > { %1485 = dma.done.wait (%p2378_p3), [#allocation5], 32   ;;  %p2379_p9 = pmov %p2378_p3 }
  0x36   : > { %p2380_p5 = pmov %p2378_p3 }
  0x37   : > { %1487 = vsyncadd (%p2379_p9), [#allocation5], 4294967264 }
  0x38   : > { %1489 = dma.done.wait (%p2380_p5), [#allocation3], 1280   ;;  %p2381_p6 = pmov %p2378_p3 }
  0x3a   : > { %1491 = vsyncadd (%p2381_p6), [#allocation3], 4294966016 }
  0x3b   : > { %173 = sfence }
  0x3c   : > { %p191_p10 = scmp.lt.s32.totalorder %s1566_s16, 1  ;;  %v1516_v0 = vmov 2   ;;  %v1517_v1 = vmov 0   ;;  %s1518_s25 = smov 2   ;;  %v1520_v7 = vmov 3   ;;  %v1521_v8 = vmov 1  }
  0x3d   : > { %1360 = vset.pattern.permute.xlu1 %v1516_v0  ;;  %1361 = vset.pattern.permute.xlu0 %v1517_v1  ;;  %s1519_s26 = smov 127   ;;  %v228_v13 = vlaneseq  ;;  %v1642_v16 = vld [vmem:[#allocation6] sm:$0xff]  ;;  %v1647_v18 = vld [vmem:[#allocation6 + $0x8] sm:$0xff]  ;;  %v1649_v19 = vld [vmem:[#allocation6 + $0x10] sm:$0xff]  ;;  %s1706_s27 = sld [smem:[#allocation2 + $0x1]] }
  0x3e   : > { %s192_s11 = scalar_select %p191_p10, %s1566_s16, 1  ;;  %v1651_v20 = vld [vmem:[#allocation6 + $0x18] sm:$0xff]  ;;  %v1658_v23 = vld [vmem:[#allocation6 + $0x20] sm:$0xff] }
  0x3f   : > { %v1640_v15 = vshrl.u32 %v228_v13, 7  ;;  %s1717_s28 = sld [smem:[#allocation2]]  ;;  %s188_s4 = sand.u32 1, %s1502_s13  }
  0x40   : > { %s1268_s17 = sshll.u32 %s192_s11, 3  ;;  %s1288_s5 = smul.u32 40, %s188_s4 }
  0x41   : > { %s194_s24 = scalar_lea.vmem %s2329_s2, %s1268_s17  ;;  %v1645_v17 = vsub.s32 2, %v1640_v15  ;;  %v1654_v21 = vsub.s32 0, %v1640_v15  ;;  %v303_v24 = vsub.s32 3, %v1640_v15  ;;  %v1662_v25 = vsub.s32 1, %v1640_v15  ;;  %s1289_s6 = smul.u32 640, %s1566_s16 }
  0x42   : > { %v210_v2 = vld [vmem:[%s194_s24] sm:$0xff]  ;;  %s190_s7 = scalar_lea.vmem [#allocation7], %s1288_s5  ;;  %s1163_s11 = scalar_lea.sflag [#allocation4], %s188_s4 }
  0x43   : > { %212 = vrot.lane.b32.xlu0 %v210_v2, %s1518_s25  ;;  %v231_v26 = vrot.slane %v1642_v16, %v1645_v17  ;;  %v235_v27 = vrot.slane %v1647_v18, %v1645_v17  ;;  %v239_v28 = vrot.slane %v1649_v19, %v1645_v17  ;;  %v243_v29 = vrot.slane %v1651_v20, %v1645_v17  ;;  %s472_s29 = sfloor.f32 %s1706_s27  ;;  %s1177_s8 = sshll.u32 %s190_s7, 4  ;;  %s2285_s8 = int_to_ptr.vmem [resolvable:$true] %s1177_s8 }
  0x44   : > { %v247_v30 = vrot.slane %v1658_v23, %v1645_v17  ;;  %v260_v31 = vrot.slane %v1642_v16, %v1654_v21  ;;  %v264_v32 = vrot.slane %v1647_v18, %v1654_v21  ;;  %v268_v33 = vrot.slane %v1649_v19, %v1654_v21  ;;  %s2283_s10 = scalar_lea.hbm %s2330_s3, %s1289_s6  ;;  %s1442_s17 = scalar_lea.vmem %s2285_s8, 640 }
  0x45   : > { %v272_v35 = vrot.slane %v1651_v20, %v1654_v21  ;;  %v276_v36 = vrot.slane %v1658_v23, %v1654_v21  ;;  %v304_v37 = vrot.slane %v1642_v16, %v303_v24  ;;  %v308_v38 = vrot.slane %v1647_v18, %v303_v24  ;;  %s470_s30 = sfloor.f32 %s1717_s28  ;;  %p1443_p12 = scmp.ne.s32.totalorder %s2285_s8, %s1442_s17 }
  0x46   : > { %v312_v39 = vrot.slane %v1649_v19, %v303_v24  ;;  %v333_v40 = vrot.slane %v1642_v16, %v1662_v25  ;;  %v337_v41 = vrot.slane %v1647_v18, %v1662_v25  ;;  %v341_v42 = vrot.slane %v1649_v19, %v1662_v25  ;;  %p2475_p0 = scmp.ne.s32.totalorder %s2373_s22, 0  ;;  %s1524_s19 = smov [#allocation7]  }
  0x47   : > { %v316_v44 = vrot.slane %v1651_v20, %v303_v24  ;;  %v320_v45 = vrot.slane %v1658_v23, %v303_v24  ;;  %v345_v46 = vrot.slane %v1651_v20, %v1662_v25  ;;  %v349_v47 = vrot.slane %v1658_v23, %v1662_v25  ;;  %s1446_s20 = sshll.u32 %s1524_s19, 4  ;;  %s1447_s20 = int_to_ptr.vmem [resolvable:$false] %s1446_s20 }
  0x48   : > { %p1444_p4 = pnand %p1443_p12, %p2475_p0  ;;  %s1448_s24 = scalar_lea.vmem %s1447_s20, 1280 }
  0x49   : > { %p1449_p8 = scmp.lt.s32.totalorder %s2285_s8, %s1447_s20  ;;  %p1450_p11 = scmp.lt.s32.totalorder %s1448_s24, %s1442_s17 }
  0x4a   : > { %p1445_p7 = pneg %p1444_p4 }
  0x4b   : > { %p1451_p13 = por %p1450_p11, %p1449_p8 }
  0x4d   : > { %p1452_p1 = pnand %p1451_p13, %p1445_p7 }
  0xb5   : > { %v213_v3 = vpop.permute.xlu0 %212 }
  0xb6   : > { %v215_v4 = vsub.f32 %v210_v2, %v213_v3 }
  0xb8   : > { %v216_v5 = vadd.f32 1.0, %v215_v4 }
  0xba   : > { %218 = vrot.lane.b32.xlu0 %v216_v5, %s1519_s26  ;;  %vm222_vm0 = vcmp.eq.f32.partialorder %v216_v5, 1.0 }
  0xbb   : > { %v223_v6 = vsel %vm222_vm0, 1, %v1517_v1 }
  0xbc   : > { %224 = vrot.lane.b32.xlu1 %v223_v6, %s1519_s26 }
  0xbe   : > { %278 = vperm.xlu0 %1361, %v210_v2  }
  0xc0   : > { %249 = vperm.xlu1 %1360, %v210_v2  }
  0xc2   : > { %1364 = vset.pattern.permute.xlu0 %v1516_v0 }
  0xc4   : > { %1362 = vset.pattern.permute.xlu1 %v1520_v7 }
  0xc5   : > { %322 = vperm.xlu1 %1362, %v210_v2  }
  0xc9   : > { %1363 = vset.pattern.permute.xlu1 %v1521_v8 }
  0xca   : > { %351 = vperm.xlu1 %1363, %v210_v2  }
  0xce   : > { %1365 = vset.pattern.permute.xlu1 %v1516_v0 }
 0x12c   : > { %v219_v9 = vpop.permute.xlu0 %218 }
 0x12d   : > { %v221_v10 = vmul.f32 %v219_v9, %v216_v5 }
 0x12e   : > { %v225_v11 = vpop.permute.xlu1 %224 }
 0x12f   : > { %vm226_vm1 = vcmp.ne.s32.totalorder %v225_v11, 0  ;;  %401 = vperm.xlu0 %1364, %v221_v10  }
 0x130   : > { %vm227_vm2 = vmand %vm222_vm0, %vm226_vm1 }
 0x131   : > { %v424_v12 = vsel %vm227_vm2, 1, %v1517_v1 }
 0x132   : > { %426 = vperm.xlu1 %1365, %v424_v12  }
 0x139   : > { %v1680_v34 = vpop.permute.xlu0 %278 }
 0x13a   : > { %v281_v48 = vmax.f32 %v260_v31, %v1680_v34  ;;  %v282_v49 = vmax.f32 %v264_v32, %v1680_v34  ;;  %v283_v50 = vmax.f32 %v268_v33, %v1680_v34  ;;  %v284_v60 = vmax.f32 %v272_v35, %v1680_v34  ;;  %v1731_v33 = vld [vmem:[#allocation6 + $0x30] sm:$0x7]  ;;  %v1733_v35 = vld [vmem:[#allocation6 + $0x38] sm:$0x7] }
 0x13b   : > { %v1638_v14 = vpop.permute.xlu1 %249  ;;  %v285_v61 = vmax.f32 %v276_v36, %v1680_v34  ;;  %v1735_v36 = vld [vmem:[#allocation6 + $0x40] sm:$0x7]  ;;  %vm206_vm5 = vcmp.gt.f32.partialorder %v1731_v33, 0.5  ;;  %vm207_vm14 = vcmp.gt.f32.partialorder %v1733_v35, 0.5 }
 0x13c   : > { %v252_v51 = vmin.f32 %v231_v26, %v1638_v14  ;;  %v253_v52 = vmin.f32 %v235_v27, %v1638_v14  ;;  %v254_v53 = vmin.f32 %v239_v28, %v1638_v14  ;;  %v255_v62 = vmin.f32 %v243_v29, %v1638_v14  ;;  %v1728_v28 = vld [vmem:[#allocation6 + $0x28] sm:$0x7] }
 0x13d   : > { %v256_v63 = vmin.f32 %v247_v30, %v1638_v14  ;;  %vm205_vm3 = vcmp.gt.f32.partialorder %v1728_v28, 0.5  ;;  %vm208_vm1 = vcmp.gt.f32.partialorder %v1735_v36, 0.5 }
 0x13e   : > { %v286_v5 = vsub.f32 %v252_v51, %v281_v48  ;;  %v287_v6 = vsub.f32 %v253_v52, %v282_v49  ;;  %v288_v7 = vsub.f32 %v254_v53, %v283_v50  ;;  %v289_v11 = vsub.f32 %v255_v62, %v284_v60 }
 0x13f   : > { %v290_v12 = vsub.f32 %v256_v63, %v285_v61  ;;  %v386_v52 = vrot.slane %v1731_v33, %v1654_v21  ;;  %v390_v53 = vrot.slane %v1733_v35, %v1654_v21  ;;  %v436_v33 = vsel %vm207_vm14, 1, %v1517_v1 }
 0x140   : > { %v1656_v22 = vpop.permute.xlu1 %322  ;;  %v291_v26 = vadd.f32 1.0, %v286_v5  ;;  %v292_v27 = vadd.f32 1.0, %v287_v6  ;;  %v293_v29 = vadd.f32 1.0, %v288_v7 }
 0x141   : > { %v325_v54 = vmin.f32 %v304_v37, %v1656_v22  ;;  %v326_v55 = vmin.f32 %v308_v38, %v1656_v22  ;;  %v327_v56 = vmin.f32 %v312_v39, %v1656_v22  ;;  %v328_v0 = vmin.f32 %v316_v44, %v1656_v22  ;;  %v1739_v38 = vld [vmem:[#allocation6 + $0x48] sm:$0x7] }
 0x142   : > { %v329_v2 = vmin.f32 %v320_v45, %v1656_v22  ;;  %v1737_v37 = vstv %s472_s29  ;;  %v294_v39 = vadd.f32 1.0, %v289_v11  ;;  %v382_v44 = vrot.slane %v1728_v28, %v1654_v21 }
 0x143   : > { %v296_v45 = vmax.f32 %v291_v26, 0.0  ;;  %v298_v48 = vmax.f32 %v293_v29, 0.0  ;;  %vm209_vm4 = vcmp.gt.f32.partialorder %v1739_v38, 0.5  ;;  %vm474_vm11 = vcmp.lt.f32.partialorder %v1642_v16, %v1737_v37 }
 0x144   : > { %vm478_vm12 = vcmp.lt.f32.partialorder %v1658_v23, %v1737_v37  ;;  %vm475_vm13 = vcmp.lt.f32.partialorder %v1647_v18, %v1737_v37  ;;  %vm1798_vm15 = vmand %vm205_vm3, %vm474_vm11  ;;  %vm476_vm0 = vcmp.lt.f32.partialorder %v1649_v19, %v1737_v37  ;;  %v2409_v28 = vmov 0 }
 0x145   : > { %v1695_v43 = vpop.permute.xlu1 %351  ;;  %vm1810_vm2 = vmand %vm209_vm4, %vm478_vm12 }
 0x146   : > { %v354_v57 = vmax.f32 %v333_v40, %v1695_v43  ;;  %v355_v58 = vmax.f32 %v337_v41, %v1695_v43  ;;  %v356_v59 = vmax.f32 %v341_v42, %v1695_v43  ;;  %v357_v3 = vmax.f32 %v345_v46, %v1695_v43 }
 0x147   : > { %v358_v4 = vmax.f32 %v349_v47, %v1695_v43  ;;  %v295_v40 = vadd.f32 1.0, %v290_v12  ;;  %v297_v46 = vmax.f32 %v292_v27, 0.0  ;;  %v484_v47 = vstv %s470_s30 }
 0x148   : > { %v359_v8 = vsub.f32 %v325_v54, %v354_v57  ;;  %v360_v9 = vsub.f32 %v326_v55, %v355_v58  ;;  %v361_v10 = vsub.f32 %v327_v56, %v356_v59  ;;  %v362_v13 = vsub.f32 %v328_v0, %v357_v3 }
 0x149   : > { %v363_v24 = vsub.f32 %v329_v2, %v358_v4  ;;  %v394_v54 = vrot.slane %v1735_v36, %v1654_v21  ;;  %v398_v55 = vrot.slane %v1739_v38, %v1654_v21  ;;  %v299_v56 = vmax.f32 %v294_v39, 0.0 }
 0x14a   : > { %v364_v30 = vadd.f32 1.0, %v359_v8  ;;  %v365_v31 = vadd.f32 1.0, %v360_v9  ;;  %v366_v32 = vadd.f32 1.0, %v361_v10  ;;  %v367_v41 = vadd.f32 1.0, %v362_v13 }
 0x14b   : > { %v368_v42 = vadd.f32 1.0, %v363_v24  ;;  %v300_v57 = vmax.f32 %v295_v40, 0.0  ;;  %vm485_vm6 = vcmp.lt.f32.partialorder %v1642_v16, %v484_v47  ;;  %vm486_vm7 = vcmp.lt.f32.partialorder %v1647_v18, %v484_v47 }
 0x14c   : > { %v369_v49 = vmax.f32 %v364_v30, 0.0  ;;  %v370_v50 = vmax.f32 %v365_v31, 0.0  ;;  %v371_v51 = vmax.f32 %v366_v32, 0.0  ;;  %v372_v58 = vmax.f32 %v367_v41, 0.0 }
 0x14d   : > { %v373_v59 = vmax.f32 %v368_v42, 0.0  ;;  %vm487_vm8 = vcmp.lt.f32.partialorder %v1649_v19, %v484_v47  ;;  %vm488_vm9 = vcmp.lt.f32.partialorder %v1651_v20, %v484_v47  ;;  %vm489_vm10 = vcmp.lt.f32.partialorder %v1658_v23, %v484_v47 }
 0x14e   : > { %v1758_v61 = vmul.f32 %v369_v49, %v296_v45  ;;  %v1760_v62 = vmul.f32 %v370_v50, %v297_v46  ;;  %v1762_v21 = vmul.f32 %v371_v51, %v298_v48  ;;  %v1765_v4 = vmul.f32 %v372_v58, %v299_v56 }
 0x14f   : > { %v1767_v5 = vmul.f32 %v373_v59, %v300_v57  ;;  %v490_v7 = vsel %vm485_vm6, 1, %v1517_v1  ;;  %v492_v11 = vsel %vm487_vm8, 1, %v1517_v1  ;;  %v493_v13 = vsel %vm488_vm9, 1, %v1517_v1  ;;  %vm1828_vm9 = vmand %vm207_vm14, %vm476_vm0 }
 0x150   : > { %v494_v26 = vsel %vm489_vm10, 1, %v1517_v1  ;;  %v495_v27 = vrot.slane %v490_v7, 1  ;;  %v491_v29 = vsel %vm486_vm7, 1, %v1517_v1  ;;  %v497_v30 = vrot.slane %v492_v11, 1  ;;  %vm1818_vm7 = vmand %vm206_vm5, %vm475_vm13 }
 0x151   : > { %v2382_v31 = vmov 0  ;;  %v498_v32 = vrot.slane %v493_v13, 1  ;;  %v2385_v39 = vmov 0  ;;  %vm477_vm6 = vcmp.lt.f32.partialorder %v1651_v20, %v1737_v37 }
 0x152   : > { %v2383_v31 = vsel %vm1798_vm15, 4294967295, %v2382_v31  ;;  %v2386_v39 = vsel %vm1810_vm2, 4294967295, %v2385_v39  ;;  %v499_v40 = vrot.slane %v494_v26, 1  ;;  %v2388_v41 = vmov 0  ;;  %vm1841_vm11 = vmand %vm208_vm1, %vm477_vm6 }
 0x153   : > { %2384 = vst [vmem:[#allocation11_spill] sm:$0xff] %v2383_v31  ;;  %2387 = vst [vmem:[#allocation12_spill] sm:$0xff] %v2386_v39  ;;  %v2389_v41 = vsel %vm1818_vm7, 4294967295, %v2388_v41  ;;  %v496_v42 = vrot.slane %v491_v29, 1  ;;  %vm1822_vm8 = vcmp.ne.s32.totalorder %v495_v27, 0  ;;  %v2394_v45 = vmov 0 }
 0x154   : > { %2390 = vst [vmem:[#allocation13_spill] sm:$0xff] %v2389_v41  ;;  %v2395_v45 = vsel %vm1828_vm9, 4294967295, %v2394_v45  ;;  %vm1832_vm10 = vcmp.ne.s32.totalorder %v497_v30, 0  ;;  %v2397_v37 = vmov 0  ;;  %v434_v46 = vsel %vm205_vm3, 1, %v1517_v1  ;;  %vm2337_vm3 = vmand %vm1798_vm15, %vm1822_vm8 }
 0x155   : > { %2396 = vst [vmem:[#allocation15_spill] sm:$0xff] %v2395_v45  ;;  %v2398_v37 = vsel %vm1832_vm10, 4294967295, %v2397_v37  ;;  %v2400_v47 = vmov 0  ;;  %vm1845_vm12 = vcmp.ne.s32.totalorder %v498_v32, 0  ;;  %v2403_v48 = vmov 0  ;;  %vm2335_vm6 = vmand %vm1828_vm9, %vm1832_vm10 }
 0x156   : > { %2399 = vst [vmem:[#allocation16_spill] sm:$0xff] %v2398_v37  ;;  %v2401_v47 = vsel %vm1841_vm11, 4294967295, %v2400_v47  ;;  %v2404_v48 = vsel %vm1845_vm12, 4294967295, %v2403_v48  ;;  %v435_v49 = vsel %vm206_vm5, 1, %v1517_v1  ;;  %vm1852_vm13 = vcmp.ne.s32.totalorder %v499_v40, 0 }
 0x157   : > { %2402 = vst [vmem:[#allocation17_spill] sm:$0xff] %v2401_v47  ;;  %2405 = vst [vmem:[#allocation18_spill] sm:$0xff] %v2404_v48  ;;  %v2406_v50 = vmov 0  ;;  %vm1860_vm0 = vcmp.ne.s32.totalorder %v496_v42, 0  ;;  %v442_v51 = vrot.slane %v434_v46, %v1662_v25  ;;  %v510_v35 = vsel %vm2337_vm3, 1, %v1517_v1 }
 0x158   : > { %v2407_v50 = vsel %vm1852_vm13, 4294967295, %v2406_v50  ;;  %v2410_v28 = vsel %vm1860_vm0, 4294967295, %v2409_v28  ;;  %vm2334_vm14 = vmand %vm1810_vm2, %vm1852_vm13  ;;  %v450_v36 = vrot.slane %v436_v33, %v1662_v25  ;;  %v2419_v30 = vmov 0 }
 0x159   : > { %2408 = vst [vmem:[#allocation19_spill] sm:$0xff] %v2407_v50  ;;  %2411 = vst [vmem:[#allocation20_spill] sm:$0xff] %v2410_v28  ;;  %v2422_v40 = vmov 0 }
 0x15a   : > { %vm2336_vm5 = vmand %vm1818_vm7, %vm1860_vm0 }
 0x1aa   : > { %v402_v60 = vpop.permute.xlu0 %401 }
 0x1ab   : > { %v404_v63 = vadd.f32 %v402_v60, %v382_v44  ;;  %v405_v0 = vadd.f32 %v402_v60, %v386_v52  ;;  %v406_v2 = vadd.f32 %v402_v60, %v390_v53  ;;  %v407_v3 = vadd.f32 %v402_v60, %v394_v54 }
 0x1ac   : > { %v408_v6 = vadd.f32 %v402_v60, %v398_v55  ;;  %v2391_v44 = vmov 0  ;;  %v437_v52 = vsel %vm208_vm1, 1, %v1517_v1  ;;  %v438_v53 = vsel %vm209_vm4, 1, %v1517_v1  ;;  %vm2412_vm4 = vmand %vm1841_vm11, %vm1845_vm12 }
 0x1ad   : > { %v409_v8 = vsub.f32 %v404_v63, %v1758_v61  ;;  %v410_v9 = vsub.f32 %v405_v0, %v1760_v62  ;;  %v411_v10 = vsub.f32 %v406_v2, %v1762_v21  ;;  %v412_v12 = vsub.f32 %v407_v3, %v1765_v4  ;;  %v427_v38 = vpop.permute.xlu1 %426 }
 0x1ae   : > { %v413_v24 = vsub.f32 %v408_v6, %v1767_v5  ;;  %v2392_v44 = vsel %vm1822_vm8, 4294967295, %v2391_v44  ;;  %v446_v54 = vrot.slane %v435_v49, %v1662_v25  ;;  %v512_v55 = vsel %vm2335_vm6, 1, %v1517_v1 }
 0x1af   : > { %1366 = vrcp.f32 %v409_v8  ;;  %2393 = vst [vmem:[#allocation14_spill] sm:$0xff] %v2392_v44  ;;  %v513_v56 = vsel %vm2412_vm4, 1, %v1517_v1  ;;  %v454_v58 = vrot.slane %v437_v52, %v1662_v25  ;;  %v458_v59 = vrot.slane %v438_v53, %v1662_v25 }
 0x1b0   : > { %1368 = vrcp.f32 %v410_v9  ;;  %vm1912_vm1 = vcmp.eq.s32.totalorder %v442_v51, 1  ;;  %v514_v63 = vsel %vm2334_vm14, 1, %v1517_v1  ;;  %vm1923_vm4 = vcmp.eq.s32.totalorder %v446_v54, 1 }
 0x1b1   : > { %1370 = vrcp.f32 %v411_v10  ;;  %v511_v25 = vsel %vm2336_vm5, 1, %v1517_v1  ;;  %v518_v6 = vrot.slane %v510_v35, %v1645_v17  ;;  %vm428_vm14 = vcmp.eq.s32.totalorder %v427_v38, 1 }
 0x1b2   : > { %1372 = vrcp.f32 %v412_v12  ;;  %v526_v9 = vrot.slane %v512_v55, %v1645_v17  ;;  %vm1938_vm6 = vcmp.eq.s32.totalorder %v450_v36, 1  ;;  %v534_v1 = vrot.slane %v514_v63, %v1645_v17 }
 0x1b3   : > { %1374 = vrcp.f32 %v413_v24  ;;  %vm462_vm5 = vcmp.eq.s32.totalorder %v454_v58, 1  ;;  %vm463_vm3 = vcmp.eq.s32.totalorder %v458_v59, 1  ;;  %vm1952_vm13 = vcmp.eq.s32.totalorder %v518_v6, 1 }
 0x1b4   : > { %v2420_v30 = vsel %vm1952_vm13, 4294967295, %v2419_v30  ;;  %vm1958_vm2 = vcmp.eq.s32.totalorder %v526_v9, 1  ;;  %v2429_v49 = vmov 0  ;;  %v2433_v54 = vmov 0 }
 0x1b5   : > { %2421 = vst [vmem:[#allocation21_spill] sm:$0xff] %v2420_v30  ;;  %v2423_v40 = vsel %vm1958_vm2, 4294967295, %v2422_v40 }
 0x1b6   : > { %2424 = vst [vmem:[#allocation22_spill] sm:$0xff] %v2423_v40 }
 0x1bc   : > { %v1367_v57 = vpop.eup %1366 }
 0x1bd   : > { %v1369_v0 = vpop.eup %1368  ;;  %v415_v2 = vmul.f32 %v1367_v57, %v1758_v61  ;;  %v530_v61 = vrot.slane %v513_v56, %v1645_v17 }
 0x1be   : > { %v1371_v7 = vpop.eup %1370  ;;  %v417_v8 = vmul.f32 %v1369_v0, %v1760_v62  ;;  %v522_v62 = vrot.slane %v511_v25, %v1645_v17  ;;  %v2425_v17 = vmov 0 }
 0x1bf   : > { %v1373_v10 = vpop.eup %1372  ;;  %v419_v11 = vmul.f32 %v1371_v7, %v1762_v21  ;;  %v429_v13 = vsel %vm428_vm14, 0.0, %v415_v2  ;;  %vm1962_vm12 = vcmp.eq.s32.totalorder %v530_v61, 1 }
 0x1c0   : > { %v1375_v24 = vpop.eup %1374  ;;  %v421_v26 = vmul.f32 %v1373_v10, %v1765_v4  ;;  %v1950_v21 = vsel %vm1912_vm1, -1.0, %v429_v13  ;;  %v430_v32 = vsel %vm428_vm14, 0.0, %v417_v8  ;;  %v2426_v17 = vsel %vm1962_vm12, 4294967295, %v2425_v17 }
 0x1c1   : > { %v423_v27 = vmul.f32 %v1375_v24, %v1767_v5  ;;  %v431_v29 = vsel %vm428_vm14, 0.0, %v419_v11  ;;  %2427 = vst [vmem:[#allocation23_spill] sm:$0xff] %v2426_v17  ;;  %vm1973_vm1 = vcmp.eq.s32.totalorder %v534_v1, 1  ;;  %v540_v51 = vsel %vm1952_vm13, %v1950_v21, -inf }
 0x1c2   : > { %v432_v4 = vsel %vm428_vm14, 0.0, %v421_v26  ;;  %v1969_v42 = vsel %vm1938_vm6, -1.0, %v431_v29  ;;  %v2430_v49 = vsel %vm1973_vm1, 4294967295, %v2429_v49  ;;  %v1984_v52 = vsel %vm1923_vm4, -1.0, %v430_v32 }
 0x1c3   : > { %v433_v5 = vsel %vm428_vm14, 0.0, %v423_v27  ;;  %v1971_v46 = vsel %vm462_vm5, -1.0, %v432_v4  ;;  %2431 = vst [vmem:[#allocation25_spill] sm:$0xff] %v2430_v49  ;;  %v553_v53 = vrot.slane %v1950_v21, 4  ;;  %vm1987_vm6 = vcmp.eq.s32.totalorder %v522_v62, 1 }
 0x1c4   : > { %2428 = vst [vmem:[#allocation24_spill] sm:$0xff] %v1971_v46  ;;  %v1977_v33 = vsel %vm463_vm3, -1.0, %v433_v5  ;;  %v2434_v54 = vsel %vm1987_vm6, 4294967295, %v2433_v54  ;;  %v542_v35 = vsel %vm1958_vm2, %v1969_v42, -inf  ;;  %v543_v36 = vsel %vm1962_vm12, %v1971_v46, -inf }
 0x1c5   : > { %2432 = vst [vmem:[#allocation26_spill] sm:$0xff] %v1977_v33  ;;  %2435 = vst [vmem:[#allocation27_spill] sm:$0xff] %v2434_v54  ;;  %v544_v38 = vsel %vm1973_vm1, %v1977_v33, -inf  ;;  %v541_v56 = vsel %vm1987_vm6, %v1984_v52, -inf  ;;  %v554_v57 = vmax.f32 %v1950_v21, %v553_v53  ;;  %v547_v59 = vmax.f32 %v542_v35, %v543_v36 }
 0x1c6   : > { %v545_v55 = vmax.f32 %v540_v51, %v544_v38  ;;  %v577_v60 = vrot.slane %v1977_v33, 4  ;;  %v559_v63 = vrot.slane %v1984_v52, 4  ;;  %v565_v0 = vrot.slane %v1969_v42, 4 }
 0x1c7   : > { %v571_v3 = vrot.slane %v1971_v46, 4  ;;  %v555_v25 = vrot.slane %v554_v57, 2 }
 0x1c8   : > { %v546_v58 = vmax.f32 %v545_v55, %v541_v56  ;;  %v578_v6 = vmax.f32 %v1977_v33, %v577_v60  ;;  %v560_v7 = vmax.f32 %v1984_v52, %v559_v63  ;;  %v566_v8 = vmax.f32 %v1969_v42, %v565_v0 }
 0x1c9   : > { %v572_v9 = vmax.f32 %v1971_v46, %v571_v3  ;;  %v556_v61 = vmax.f32 %v554_v57, %v555_v25 }
 0x1ca   : > { %v548_v2 = vmax.f32 %v546_v58, %v547_v59  ;;  %v579_v10 = vrot.slane %v578_v6, 2  ;;  %v561_v11 = vrot.slane %v560_v7, 2  ;;  %v567_v12 = vrot.slane %v566_v8, 2 }
 0x1cb   : > { %v573_v13 = vrot.slane %v572_v9, 2  ;;  %v557_v1 = vrot.slane %v556_v61, 1 }
 0x1cc   : > { %549 = vmax.xlane.f32.xlu1 %v548_v2  ;;  %v580_v24 = vmax.f32 %v578_v6, %v579_v10  ;;  %v562_v26 = vmax.f32 %v560_v7, %v561_v11  ;;  %v568_v62 = vmax.f32 %v566_v8, %v567_v12 }
 0x1cd   : > { %v574_v27 = vmax.f32 %v572_v9, %v573_v13  ;;  %v2012_v29 = vmax.f32 %v556_v61, %v557_v1 }
 0x1ce   : > { %v581_v32 = vrot.slane %v580_v24, 1  ;;  %v563_v4 = vrot.slane %v562_v26, 1  ;;  %v569_v5 = vrot.slane %v568_v62, 1 }
 0x1cf   : > { %v575_v51 = vrot.slane %v574_v27, 1  ;;  %vm585_vm3 = vcmp.eq.f32.partialorder %v1950_v21, %v2012_v29 }
 0x1d0   : > { %v2016_v53 = vmax.f32 %v580_v24, %v581_v32  ;;  %v2018_v35 = vmax.f32 %v562_v26, %v563_v4  ;;  %v2020_v36 = vmax.f32 %v568_v62, %v569_v5  ;;  %v590_v55 = vsel %vm585_vm3, %v1640_v15, 8 }
 0x1d1   : > { %v2022_v38 = vmax.f32 %v574_v27, %v575_v51  ;;  %v595_v56 = vrot.slane %v590_v55, 4 }
 0x1d2   : > { %vm589_vm5 = vcmp.eq.f32.partialorder %v1977_v33, %v2016_v53  ;;  %vm586_vm14 = vcmp.eq.f32.partialorder %v1984_v52, %v2018_v35  ;;  %vm587_vm4 = vcmp.eq.f32.partialorder %v1969_v42, %v2020_v36 }
 0x1d3   : > { %vm588_vm11 = vcmp.eq.f32.partialorder %v1971_v46, %v2022_v38  ;;  %v594_v57 = vsel %vm589_vm5, %v1640_v15, 8  ;;  %v591_v58 = vsel %vm586_vm14, %v1640_v15, 8  ;;  %v592_v59 = vsel %vm587_vm4, %v1640_v15, 8 }
 0x1d4   : > { %v593_v60 = vsel %vm588_vm11, %v1640_v15, 8  ;;  %vm596_vm3 = vcmp.lt.s32.totalorder %v590_v55, %v595_v56  ;;  %v631_v63 = vrot.slane %v594_v57, 4  ;;  %v604_v0 = vrot.slane %v591_v58, 4 }
 0x1d5   : > { %v613_v2 = vrot.slane %v592_v59, 4  ;;  %v597_v3 = vsel %vm596_vm3, %v590_v55, %v595_v56  ;;  %v622_v25 = vrot.slane %v593_v60, 4 }
 0x1d6   : > { %vm632_vm10 = vcmp.lt.s32.totalorder %v594_v57, %v631_v63  ;;  %v598_v6 = vrot.slane %v597_v3, 2  ;;  %vm605_vm9 = vcmp.lt.s32.totalorder %v591_v58, %v604_v0 }
 0x1d7   : > { %vm614_vm0 = vcmp.lt.s32.totalorder %v592_v59, %v613_v2  ;;  %vm623_vm7 = vcmp.lt.s32.totalorder %v593_v60, %v622_v25  ;;  %v633_v7 = vsel %vm632_vm10, %v594_v57, %v631_v63  ;;  %v606_v8 = vsel %vm605_vm9, %v591_v58, %v604_v0 }
 0x1d8   : > { %v615_v9 = vsel %vm614_vm0, %v592_v59, %v613_v2  ;;  %vm599_vm5 = vcmp.lt.s32.totalorder %v597_v3, %v598_v6  ;;  %v624_v61 = vsel %vm623_vm7, %v593_v60, %v622_v25  ;;  %v634_v10 = vrot.slane %v633_v7, 2 }
 0x1d9   : > { %v607_v11 = vrot.slane %v606_v8, 2  ;;  %v616_v12 = vrot.slane %v615_v9, 2  ;;  %v600_v13 = vsel %vm599_vm5, %v597_v3, %v598_v6  ;;  %v625_v1 = vrot.slane %v624_v61, 2 }
 0x1da   : > { %vm635_vm11 = vcmp.lt.s32.totalorder %v633_v7, %v634_v10  ;;  %v601_v24 = vrot.slane %v600_v13, 1  ;;  %v2347_v60 = vmov 0.0  }
 0x1db   : > { %vm608_vm14 = vcmp.lt.s32.totalorder %v606_v8, %v607_v11  ;;  %vm617_vm4 = vcmp.lt.s32.totalorder %v615_v9, %v616_v12  ;;  %vm626_vm3 = vcmp.lt.s32.totalorder %v624_v61, %v625_v1  ;;  %v636_v26 = vsel %vm635_vm11, %v633_v7, %v634_v10 }
 0x1dc   : > { %v609_v62 = vsel %vm608_vm14, %v606_v8, %v607_v11  ;;  %v618_v27 = vsel %vm617_vm4, %v615_v9, %v616_v12  ;;  %vm602_vm8 = vcmp.lt.s32.totalorder %v600_v13, %v601_v24  ;;  %v627_v32 = vsel %vm626_vm3, %v624_v61, %v625_v1 }
 0x1dd   : > { %v637_v4 = vrot.slane %v636_v26, 1  ;;  %v610_v5 = vrot.slane %v609_v62, 1  ;;  %v619_v51 = vrot.slane %v618_v27, 1  ;;  %v603_v55 = vsel %vm602_vm8, %v600_v13, %v601_v24 }
 0x1de   : > { %v628_v56 = vrot.slane %v627_v32, 1  ;;  %vm720_vm0 = vcmp.eq.s32.totalorder %v1640_v15, %v603_v55  ;;  %vm1040_vm3 = vcmask 1040384  }
 0x1df   : > { %vm638_vm7 = vcmp.lt.s32.totalorder %v636_v26, %v637_v4  ;;  %vm611_vm9 = vcmp.lt.s32.totalorder %v609_v62, %v610_v5  ;;  %vm620_vm10 = vcmp.lt.s32.totalorder %v618_v27, %v619_v51  ;;  %v1275_v63 = vsel %vm720_vm0, 1.0, %v2347_v60 }
 0x1e0   : > { %vm629_vm5 = vcmp.lt.s32.totalorder %v627_v32, %v628_v56  ;;  %v639_v57 = vsel %vm638_vm7, %v636_v26, %v637_v4  ;;  %v612_v58 = vsel %vm611_vm9, %v609_v62, %v610_v5  ;;  %v621_v59 = vsel %vm620_vm10, %v618_v27, %v619_v51 }
 0x1e1   : > { %v630_v0 = vsel %vm629_vm5, %v627_v32, %v628_v56  ;;  %vm724_vm11 = vcmp.eq.s32.totalorder %v1640_v15, %v639_v57  ;;  %vm721_vm14 = vcmp.eq.s32.totalorder %v1640_v15, %v612_v58  ;;  %vm722_vm8 = vcmp.eq.s32.totalorder %v1640_v15, %v621_v59 }
 0x1e2   : > { %v735_v2 = vmul.f32 %v1275_v63, %v1680_v34  ;;  %vm723_vm4 = vcmp.eq.s32.totalorder %v1640_v15, %v630_v0  ;;  %v1279_v3 = vsel %vm724_vm11, 1.0, %v2347_v60  ;;  %v1276_v25 = vsel %vm721_vm14, 1.0, %v2347_v60 }
 0x1e3   : > { %v1277_v6 = vsel %vm722_vm8, 1.0, %v2347_v60  ;;  %v1278_v7 = vsel %vm723_vm4, 1.0, %v2347_v60  ;;  %v739_v9 = vmul.f32 %v1279_v3, %v1680_v34  ;;  %v736_v61 = vmul.f32 %v1276_v25, %v1680_v34 }
 0x1e4   : > { %v740_v8 = vrot.slane %v735_v2, 4  ;;  %v737_v10 = vmul.f32 %v1277_v6, %v1680_v34  ;;  %v738_v11 = vmul.f32 %v1278_v7, %v1680_v34  ;;  %v805_v62 = vmul.f32 %v1275_v63, %v1638_v14 }
 0x1e5   : > { %v764_v13 = vrot.slane %v739_v9, 4  ;;  %v746_v15 = vrot.slane %v736_v61, 4  ;;  %v770_v32 = vmul.f32 %v1275_v63, %v1695_v43  ;;  %v771_v51 = vmul.f32 %v1276_v25, %v1695_v43 }
 0x1e6   : > { %v741_v12 = vadd.f32 %v740_v8, %v735_v2  ;;  %v752_v1 = vrot.slane %v737_v10, 4  ;;  %v758_v24 = vrot.slane %v738_v11, 4  ;;  %v809_v55 = vmul.f32 %v1279_v3, %v1638_v14 }
 0x1e7   : > { %v765_v27 = vadd.f32 %v764_v13, %v739_v9  ;;  %v747_v4 = vadd.f32 %v746_v15, %v736_v61  ;;  %v772_v34 = vmul.f32 %v1277_v6, %v1695_v43  ;;  %v774_v57 = vmul.f32 %v1279_v3, %v1695_v43 }
 0x1e8   : > { %v742_v26 = vrot.slane %v741_v12, 2  ;;  %v753_v5 = vadd.f32 %v752_v1, %v737_v10  ;;  %v759_v56 = vadd.f32 %v758_v24, %v738_v11  ;;  %v806_v58 = vmul.f32 %v1276_v25, %v1638_v14 }
 0x1e9   : > { %v807_v59 = vmul.f32 %v1277_v6, %v1638_v14  ;;  %v808_v2 = vmul.f32 %v1278_v7, %v1638_v14  ;;  %v810_v8 = vrot.slane %v805_v62, 4  ;;  %v840_v9 = vmul.f32 %v1275_v63, %v1656_v22 }
 0x1ea   : > { %v743_v0 = vadd.f32 %v742_v26, %v741_v12  ;;  %v766_v61 = vrot.slane %v765_v27, 2  ;;  %v748_v10 = vrot.slane %v747_v4, 2  ;;  %v754_v13 = vrot.slane %v753_v5, 2 }
 0x1eb   : > { %v775_v15 = vrot.slane %v770_v32, 4  ;;  %v781_v1 = vrot.slane %v771_v51, 4  ;;  %v834_v11 = vrot.slane %v809_v55, 4  ;;  %v844_v24 = vmul.f32 %v1279_v3, %v1656_v22 }
 0x1ec   : > { %v760_v60 = vrot.slane %v759_v56, 2  ;;  %v787_v50 = vrot.slane %v772_v34, 4  ;;  %v744_v39 = vrot.slane %v743_v0, 1  ;;  %v773_v48 = vmul.f32 %v1278_v7, %v1695_v43 }
 0x1ed   : > { %v816_v47 = vrot.slane %v806_v58, 4  ;;  %v841_v12 = vmul.f32 %v1276_v25, %v1656_v22  ;;  %v767_v14 = vadd.f32 %v766_v61, %v765_v27  ;;  %v822_v26 = vrot.slane %v807_v59, 4 }
 0x1ee   : > { %v842_v63 = vmul.f32 %v1277_v6, %v1656_v22  ;;  %v843_v37 = vmul.f32 %v1278_v7, %v1656_v22  ;;  %v749_v45 = vadd.f32 %v748_v10, %v747_v4  ;;  %v2067_v28 = vadd.f32 %v754_v13, %v753_v5 }
 0x1ef   : > { %v776_v41 = vadd.f32 %v775_v15, %v770_v32  ;;  %v782_v44 = vadd.f32 %v781_v1, %v771_v51  ;;  %v2069_v3 = vadd.f32 %v760_v60, %v759_v56  ;;  %v788_v31 = vadd.f32 %v787_v50, %v772_v34 }
 0x1f0   : > { %v811_v49 = vadd.f32 %v810_v8, %v805_v62  ;;  %v828_v17 = vrot.slane %v808_v2, 4  ;;  %v2071_v43 = vadd.f32 %v744_v39, %v743_v0  ;;  %v817_v40 = vadd.f32 %v816_v47, %v806_v58 }
 0x1f1   : > { %v845_v25 = vrot.slane %v840_v9, 4  ;;  %v851_v27 = vrot.slane %v841_v12, 4  ;;  %v793_v61 = vrot.slane %v773_v48, 4  ;;  %v823_v54 = vadd.f32 %v822_v26, %v807_v59 }
 0x1f2   : > { %v857_v6 = vrot.slane %v842_v63, 4  ;;  %v863_v30 = vrot.slane %v843_v37, 4  ;;  %v768_v22 = vrot.slane %v767_v14, 1  ;;  %v777_v7 = vrot.slane %v776_v41, 2 }
 0x1f3   : > { %v799_v4 = vrot.slane %v774_v57, 4  ;;  %v869_v5 = vrot.slane %v844_v24, 4  ;;  %v750_v32 = vrot.slane %v749_v45, 1  ;;  %v783_v51 = vrot.slane %v782_v44, 2 }
 0x1f4   : > { %v812_v60 = vrot.slane %v811_v49, 2  ;;  %v829_v56 = vadd.f32 %v828_v17, %v808_v2  ;;  %v818_v50 = vrot.slane %v817_v40, 2  ;;  %v835_v62 = vadd.f32 %v834_v11, %v809_v55 }
 0x1f5   : > { %v846_v34 = vadd.f32 %v845_v25, %v840_v9  ;;  %v852_v39 = vadd.f32 %v851_v27, %v841_v12  ;;  %v794_v0 = vadd.f32 %v793_v61, %v773_v48  ;;  %v824_v47 = vrot.slane %v823_v54, 2 }
 0x1f6   : > { %v858_v58 = vadd.f32 %v857_v6, %v842_v63  ;;  %v864_v8 = vadd.f32 %v863_v30, %v843_v37  ;;  %v756_v59 = vrot.slane %v2067_v28, 1  ;;  %v762_v10 = vrot.slane %v2069_v3, 1 }
 0x1f7   : > { %v800_v13 = vadd.f32 %v799_v4, %v774_v57  ;;  %v870_v15 = vadd.f32 %v869_v5, %v844_v24  ;;  %v2075_v1 = vadd.f32 %v768_v22, %v767_v14  ;;  %v789_v26 = vrot.slane %v788_v31, 2 }
 0x1f8   : > { %v813_v33 = vadd.f32 %v812_v60, %v811_v49  ;;  %v830_v46 = vrot.slane %v829_v56, 2  ;;  %v819_v17 = vadd.f32 %v818_v50, %v817_v40  ;;  %v836_v2 = vrot.slane %v835_v62, 2 }
 0x1f9   : > { %v847_v55 = vrot.slane %v846_v34, 2  ;;  %v853_v9 = vrot.slane %v852_v39, 2  ;;  %v795_v11 = vrot.slane %v794_v0, 2  ;;  %v825_v48 = vadd.f32 %v824_v47, %v823_v54 }
 0x1fa   : > { %v859_v12 = vrot.slane %v858_v58, 2  ;;  %v865_v63 = vrot.slane %v864_v8, 2  ;;  %v778_v37 = vadd.f32 %v777_v7, %v776_v41  ;;  %v784_v30 = vadd.f32 %v783_v51, %v782_v44 }
 0x1fb   : > { %v801_v25 = vrot.slane %v800_v13, 2  ;;  %v871_v27 = vrot.slane %v870_v15, 2  ;;  %v2077_v61 = vadd.f32 %v750_v32, %v749_v45  ;;  %v790_v57 = vadd.f32 %v789_v26, %v788_v31 }
 0x1fc   : > { %v814_v24 = vrot.slane %v813_v33, 1  ;;  %v831_v14 = vadd.f32 %v830_v46, %v829_v56  ;;  %v820_v6 = vrot.slane %v819_v17, 1  ;;  %v837_v49 = vadd.f32 %v836_v2, %v835_v62 }
 0x1fd   : > { %v848_v22 = vadd.f32 %v847_v55, %v846_v34  ;;  %v854_v40 = vadd.f32 %v853_v9, %v852_v39  ;;  %v796_v4 = vadd.f32 %v795_v11, %v794_v0  ;;  %v826_v5 = vrot.slane %v825_v48, 1 }
 0x1fe   : > { %v860_v60 = vadd.f32 %v859_v12, %v858_v58  ;;  %v866_v50 = vadd.f32 %v865_v63, %v864_v8  ;;  %v2080_v54 = vadd.f32 %v756_v59, %v2067_v28  ;;  %v779_v41 = vrot.slane %v778_v37, 1 }
 0x1ff   : > { %v802_v44 = vadd.f32 %v801_v25, %v800_v13  ;;  %v872_v7 = vadd.f32 %v871_v27, %v870_v15  ;;  %v785_v51 = vrot.slane %v784_v30, 1  ;;  %v791_v45 = vrot.slane %v790_v57, 1 }
 0x200   : > { %v815_v32 = vadd.f32 %v814_v24, %v813_v33  ;;  %v832_v31 = vrot.slane %v831_v14, 1  ;;  %v821_v47 = vadd.f32 %v820_v6, %v819_v17  ;;  %v838_v46 = vrot.slane %v837_v49, 1 }
 0x201   : > { %v849_v56 = vrot.slane %v848_v22, 1  ;;  %v855_v62 = vrot.slane %v854_v40, 1  ;;  %v797_v34 = vrot.slane %v796_v4, 1  ;;  %v827_v39 = vadd.f32 %v826_v5, %v825_v48 }
 0x202   : > { %v861_v0 = vrot.slane %v860_v60, 1  ;;  %v867_v26 = vrot.slane %v866_v50, 1  ;;  %v763_v58 = vadd.f32 %v762_v10, %v2069_v3  ;;  %v780_v8 = vadd.f32 %v779_v41, %v778_v37 }
 0x203   : > { %v803_v28 = vrot.slane %v802_v44, 1  ;;  %v873_v59 = vrot.slane %v872_v7, 1  ;;  %v786_v2 = vadd.f32 %v785_v51, %v784_v30  ;;  %v792_v13 = vadd.f32 %v791_v45, %v790_v57 }
 0x204   : > { %v833_v15 = vadd.f32 %v832_v31, %v831_v14  ;;  %v875_v55 = vsub.f32 %v815_v32, %v2071_v43  ;;  %v839_v33 = vadd.f32 %v838_v46, %v837_v49  ;;  %v850_v9 = vadd.f32 %v849_v56, %v848_v22 }
 0x205   : > { %v856_v17 = vadd.f32 %v855_v62, %v854_v40  ;;  %v876_v11 = vsub.f32 %v821_v47, %v2077_v61  ;;  %v798_v12 = vadd.f32 %v797_v34, %v796_v4  ;;  %v862_v63 = vadd.f32 %v861_v0, %v860_v60 }
 0x206   : > { %v868_v48 = vadd.f32 %v867_v26, %v866_v50  ;;  %v877_v25 = vsub.f32 %v827_v39, %v2080_v54  ;;  %v804_v27 = vadd.f32 %v803_v28, %v802_v44  ;;  %v874_v3 = vadd.f32 %v873_v59, %v872_v7 }
 0x207   : > { %v878_v10 = vsub.f32 %v833_v15, %v763_v58  ;;  %v880_v37 = vadd.f32 1.0, %v875_v55  ;;  %v879_v30 = vsub.f32 %v839_v33, %v2075_v1  ;;  %v881_v57 = vadd.f32 1.0, %v876_v11 }
 0x208   : > { %v885_v24 = vsub.f32 %v850_v9, %v780_v8  ;;  %v886_v14 = vsub.f32 %v856_v17, %v786_v2  ;;  %v882_v6 = vadd.f32 1.0, %v877_v25  ;;  %v887_v49 = vsub.f32 %v862_v63, %v792_v13 }
 0x209   : > { %v888_v22 = vsub.f32 %v868_v48, %v798_v12  ;;  %v889_v40 = vsub.f32 %v874_v3, %v804_v27  ;;  %v883_v5 = vadd.f32 1.0, %v878_v10  ;;  %v950_v4 = vmul.f32 %v880_v37, %v1642_v16 }
 0x20a   : > { %v884_v60 = vadd.f32 1.0, %v879_v30  ;;  %v890_v50 = vadd.f32 1.0, %v885_v24  ;;  %v891_v41 = vadd.f32 1.0, %v886_v14  ;;  %v951_v44 = vmul.f32 %v881_v57, %v1647_v18 }
 0x20b   : > { %v892_v7 = vadd.f32 1.0, %v887_v49  ;;  %v893_v51 = vadd.f32 1.0, %v888_v22  ;;  %v925_v45 = vrot.slane %v1642_v16, 2  ;;  %v952_v32 = vmul.f32 %v882_v6, %v1649_v19 }
 0x20c   : > { %v894_v31 = vadd.f32 1.0, %v889_v40  ;;  %v895_v47 = vmul.f32 0.5, %v880_v37  ;;  %v896_v46 = vmul.f32 0.5, %v881_v57  ;;  %v926_v56 = vrot.slane %v1647_v18, 2  ;;  %v1400_v40 = vld [vmem:[#allocation6 + $0x20] sm:$0xff] }
 0x20d   : > { %v897_v62 = vmul.f32 0.5, %v882_v6  ;;  %v898_v34 = vmul.f32 0.5, %v883_v5  ;;  %v953_v39 = vmul.f32 %v883_v5, %v1651_v20  ;;  %1376 = vlog2.f32 %v950_v4  ;;  %v1399_v6 = vld [vmem:[#allocation6 + $0x18] sm:$0xff] }
 0x20e   : > { %v905_v0 = vmul.f32 0.5, %v890_v50  ;;  %v906_v26 = vmul.f32 0.5, %v891_v41  ;;  %v954_v28 = vmul.f32 %v884_v60, %v1658_v23  ;;  %1378 = vlog2.f32 %v951_v44 }
 0x20f   : > { %v899_v59 = vmul.f32 0.5, %v884_v60  ;;  %v907_v15 = vmul.f32 0.5, %v892_v7  ;;  %v908_v55 = vmul.f32 0.5, %v893_v51  ;;  %1380 = vlog2.f32 %v952_v32 }
 0x210   : > { %v900_v33 = vadd.f32 %v895_v47, %v2071_v43  ;;  %v901_v9 = vadd.f32 %v896_v46, %v2077_v61  ;;  %v909_v17 = vmul.f32 0.5, %v894_v31  ;;  %v965_v11 = vmul.f32 %v890_v50, %v1642_v16 }
 0x211   : > { %v902_v63 = vadd.f32 %v897_v62, %v2080_v54  ;;  %v903_v48 = vadd.f32 %v898_v34, %v763_v58  ;;  %1382 = vlog2.f32 %v953_v39  ;;  %v966_v25 = vmul.f32 %v891_v41, %v1647_v18  ;;  %v1396_v58 = vld [vmem:[#allocation6] sm:$0xff]  ;;  %v1397_v18 = vld [vmem:[#allocation6 + $0x8] sm:$0xff] }
 0x212   : > { %v910_v3 = vadd.f32 %v905_v0, %v780_v8  ;;  %v911_v23 = vadd.f32 %v906_v26, %v786_v2  ;;  %1384 = vlog2.f32 %v954_v28  ;;  %v967_v10 = vmul.f32 %v892_v7, %v1649_v19  ;;  %v1398_v2 = vld [vmem:[#allocation6 + $0x10] sm:$0xff] }
 0x213   : > { %v912_v37 = vadd.f32 %v907_v15, %v792_v13  ;;  %v913_v30 = vadd.f32 %v908_v55, %v798_v12  ;;  %v927_v43 = vrot.slane %v1649_v19, 2  ;;  %v968_v61 = vmul.f32 %v893_v51, %v1651_v20 }
 0x214   : > { %v904_v57 = vadd.f32 %v899_v59, %v2075_v1  ;;  %v914_v16 = vadd.f32 %v909_v17, %v804_v27  ;;  %v928_v54 = vrot.slane %v1651_v20, 2  ;;  %1386 = vlog2.f32 %v965_v11 }
 0x215   : > { %v915_v24 = vsub.f32 %v900_v33, %v1396_v58  ;;  %v916_v8 = vsub.f32 %v901_v9, %v1397_v18  ;;  %v917_v14 = vsub.f32 %v902_v63, %v1398_v2  ;;  %1388 = vlog2.f32 %v966_v25 }
 0x216   : > { %v918_v13 = vsub.f32 %v903_v48, %v1399_v6  ;;  %v940_v12 = vsub.f32 %v910_v3, %v1396_v58  ;;  %v941_v49 = vsub.f32 %v911_v23, %v1397_v18  ;;  %1390 = vlog2.f32 %v967_v10 }
 0x217   : > { %v942_v19 = vsub.f32 %v912_v37, %v1398_v2  ;;  %v943_v22 = vsub.f32 %v913_v30, %v1399_v6  ;;  %v969_v1 = vmul.f32 %v1400_v40, %v894_v31  ;;  %1392 = vlog2.f32 %v968_v61 }
 0x218   : > { %v919_v27 = vsub.f32 %v904_v57, %v1400_v40  ;;  %v929_v20 = vrot.slane %v1400_v40, 2  ;;  %v944_v5 = vsub.f32 %v914_v16, %v1400_v40  ;;  %v935_v4 = vmul.f32 %v925_v45, %v915_v24 }
 0x219   : > { %v936_v60 = vmul.f32 %v926_v56, %v916_v8  ;;  %v937_v41 = vmul.f32 %v927_v43, %v917_v14  ;;  %v945_v44 = vmul.f32 %v940_v12, %v925_v45  ;;  %v946_v7 = vmul.f32 %v941_v49, %v926_v56 }
 0x21a   : > { %v1377_v50 = vpop.eup %1376  ;;  %v938_v32 = vmul.f32 %v928_v54, %v918_v13  ;;  %v947_v47 = vmul.f32 %v942_v19, %v927_v43  ;;  %v948_v46 = vmul.f32 %v943_v22, %v928_v54  ;;  %1394 = vlog2.f32 %v969_v1 }
 0x21b   : > { %v1379_v51 = vpop.eup %1378  ;;  %v939_v34 = vmul.f32 %v929_v20, %v919_v27  ;;  %v949_v39 = vmul.f32 %v944_v5, %v929_v20  ;;  %vm685_vm7 = vcmp.lt.f32.partialorder %v2012_v29, 0.3  ;;  %v956_v31 = vmul.f32 0.6931472, %v1377_v50 }
 0x21c   : > { %v1381_v62 = vpop.eup %1380  ;;  %v985_v0 = vrot.slane %v935_v4, 4  ;;  %v986_v26 = vrot.slane %v936_v60, 4  ;;  %vm686_vm9 = vcmp.lt.f32.partialorder %v2018_v35, 0.3  ;;  %v958_v59 = vmul.f32 0.6931472, %v1379_v51 }
 0x21d   : > { %v987_v45 = vrot.slane %v937_v41, 4  ;;  %v1000_v56 = vrot.slane %v945_v44, 4  ;;  %v1001_v15 = vrot.slane %v946_v7, 4  ;;  %v960_v33 = vmul.f32 0.6931472, %v1381_v62  ;;  %v2436_v44 = vld [vmem:[#allocation24_spill] sm:$0xff] }
 0x21e   : > { %v1383_v28 = vpop.eup %1382  ;;  %v988_v9 = vrot.slane %v938_v32, 4  ;;  %v1002_v17 = vrot.slane %v947_v47, 4  ;;  %v1003_v11 = vrot.slane %v948_v46, 4  ;;  %v989_v63 = vrot.slane %v939_v34, 4  ;;  %v2437_v7 = vld [vmem:[#allocation26_spill] sm:$0xff] }
 0x21f   : > { %v1385_v55 = vpop.eup %1384  ;;  %v1004_v48 = vrot.slane %v949_v39, 4  ;;  %vm687_vm10 = vcmp.lt.f32.partialorder %v2020_v36, 0.3  ;;  %vm688_vm0 = vcmp.lt.f32.partialorder %v2022_v38, 0.3  ;;  %v1015_v23 = vrot.slane %v956_v31, 4 }
 0x220   : > { %v962_v3 = vmul.f32 0.6931472, %v1383_v28  ;;  %vm1046_vm5 = vcmask 1041408   ;;  %vm689_vm11 = vcmp.lt.f32.partialorder %v2016_v53, 0.3  ;;  %v1016_v30 = vrot.slane %v958_v59, 4 }
 0x221   : > { %v1387_v25 = vpop.eup %1386  ;;  %v2109_v37 = vmul.f32 0.6931472, %v1385_v55  ;;  %v1041_v43 = vsel %vm1040_vm3, %v985_v0, %v1000_v56  ;;  %v1042_v61 = vsel %vm1040_vm3, %v986_v26, %v1001_v15  ;;  %v1017_v16 = vrot.slane %v960_v33, 4 }
 0x222   : > { %v1389_v10 = vpop.eup %1388  ;;  %v1043_v54 = vsel %vm1040_vm3, %v987_v45, %v1002_v17  ;;  %v1044_v58 = vsel %vm1040_vm3, %v988_v9, %v1003_v11  ;;  %v1523_v24 = vmov -1.0   ;;  %v1045_v2 = vsel %vm1040_vm3, %v989_v63, %v1004_v48 }
 0x223   : > { %v1391_v57 = vpop.eup %1390  ;;  %v2117_v18 = vsel %vm685_vm7, 0.0, %v1523_v24  ;;  %v2122_v14 = vsel %vm686_vm9, 0.0, %v1523_v24  ;;  %v2126_v6 = vsel %vm687_vm10, 0.0, %v1523_v24  ;;  %v2130_v13 = vsel %vm688_vm0, 0.0, %v1523_v24 }
 0x224   : > { %v1393_v8 = vpop.eup %1392  ;;  %v971_v12 = vmul.f32 0.6931472, %v1387_v25  ;;  %v1018_v49 = vrot.slane %v962_v3, 4  ;;  %v1047_v19 = vsel %vm1046_vm5, %v1041_v43, %v1015_v23  ;;  %vm1052_vm14 = vcmask 1042432  }
 0x225   : > { %v2135_v22 = vsel %vm689_vm11, 0.0, %v1523_v24  ;;  %v973_v1 = vmul.f32 0.6931472, %v1389_v10  ;;  %v1019_v27 = vrot.slane %v2109_v37, 4  ;;  %v1048_v20 = vsel %vm1046_vm5, %v1042_v61, %v1016_v30 }
 0x226   : > { %v975_v5 = vmul.f32 0.6931472, %v1391_v57  ;;  %v977_v4 = vmul.f32 0.6931472, %v1393_v8  ;;  %v1049_v60 = vsel %vm1046_vm5, %v1043_v54, %v1017_v16  ;;  %v2438_v51 = vmov 0.0  }
 0x227   : > { %v1395_v41 = vpop.eup %1394  ;;  %v1030_v26 = vrot.slane %v971_v12, 4  ;;  %v1050_v28 = vsel %vm1046_vm5, %v1044_v58, %v1018_v49  ;;  %v1031_v56 = vrot.slane %v973_v1, 4  ;;  %v1051_v10 = vsel %vm1046_vm5, %v1045_v2, %v1019_v27 }
 0x228   : > { %v979_v31 = vmul.f32 0.6931472, %v1395_v41  ;;  %v1032_v9 = vrot.slane %v975_v5, 4  ;;  %v1033_v17 = vrot.slane %v977_v4, 4  ;;  %vm705_vm0 = vcmp.ge.f32.partialorder %v2012_v29, 0.7 }
 0x229   : > { %v2153_v37 = vsel %vm1052_vm14, %v1047_v19, %v1030_v26  ;;  %vm706_vm11 = vcmp.ge.f32.partialorder %v2018_v35, 0.7  ;;  %v2160_v61 = vsel %vm1052_vm14, %v1048_v20, %v1031_v56  ;;  %v2450_v35 = vld [vmem:[#allocation20_spill] sm:$0xff]  ;;  %v2460_v56 = vld [vmem:[#allocation18_spill] sm:$0xff] }
 0x22a   : > { %v1034_v48 = vrot.slane %v979_v31, 4  ;;  %v2164_v58 = vsel %vm1052_vm14, %v1049_v60, %v1032_v9  ;;  %v2167_v24 = vsel %vm1052_vm14, %v1050_v28, %v1033_v17  ;;  %v1058_v27 = vsel %vm1952_vm13, %v2153_v37, 0.0 }
 0x22b   : > { %v1059_v5 = vsel %vm1987_vm6, %v2160_v61, 0.0  ;;  %v1060_v41 = vsel %vm1958_vm2, %v2164_v58, 0.0 }
 0x22c   : > { %v2170_v12 = vsel %vm1052_vm14, %v1051_v10, %v1034_v48 }
 0x255   : > { %v550_v40 = vpop.xlane.xlu1 %549 }
 0x256   : > { %vm551_vm8 = vcmp.eq.f32.partialorder %v550_v40, 0.0 }
 0x257   : > { %v552_v50 = vsel %vm551_vm8, 1e-05, %v550_v40  ;;  %vm707_vm8 = vcmp.ge.f32.partialorder %v2020_v36, 0.7 }
 0x258   : > { %vm640_vm4 = vcmp.eq.f32.partialorder %v1950_v21, %v552_v50  ;;  %vm641_vm3 = vcmp.eq.f32.partialorder %v1984_v52, %v552_v50  ;;  %vm642_vm7 = vcmp.eq.f32.partialorder %v1969_v42, %v552_v50  ;;  %vm643_vm9 = vcmp.eq.f32.partialorder %v2436_v44, %v552_v50 }
 0x259   : > { %vm644_vm10 = vcmp.eq.f32.partialorder %v2437_v7, %v552_v50  ;;  %v1270_v32 = vsel %vm640_vm4, 1.0, %v2438_v51  ;;  %v1271_v47 = vsel %vm641_vm3, 1.0, %v2438_v51  ;;  %v1272_v46 = vsel %vm642_vm7, 1.0, %v2438_v51 }
 0x25a   : > { %v1273_v62 = vsel %vm643_vm9, 1.0, %v2438_v51  ;;  %v1274_v34 = vsel %vm644_vm10, 1.0, %v2438_v51  ;;  %v655_v39 = vrot.slane %v1270_v32, 4  ;;  %v661_v21 = vrot.slane %v1271_v47, 4 }
 0x25b   : > { %v667_v52 = vrot.slane %v1272_v46, 4  ;;  %v673_v0 = vrot.slane %v1273_v62, 4  ;;  %v679_v42 = vrot.slane %v1274_v34, 4  ;;  %vm708_vm4 = vcmp.ge.f32.partialorder %v2022_v38, 0.7  ;;  %v2455_v38 = vld [vmem:[#allocation16_spill] sm:$0xff] }
 0x25c   : > { %v656_v59 = vadd.f32 %v1270_v32, %v655_v39  ;;  %v662_v45 = vadd.f32 %v1271_v47, %v661_v21  ;;  %vm709_vm3 = vcmp.ge.f32.partialorder %v2016_v53, 0.7  ;;  %v2458_v53 = vld [vmem:[#allocation17_spill] sm:$0xff] }
 0x25d   : > { %v668_v15 = vadd.f32 %v1272_v46, %v667_v52  ;;  %v674_v55 = vadd.f32 %v1273_v62, %v673_v0  ;;  %v680_v33 = vadd.f32 %v1274_v34, %v679_v42  ;;  %v1061_v46 = vsel %vm1962_vm12, %v2167_v24, 0.0 }
 0x25e   : > { %v657_v11 = vrot.slane %v656_v59, 2  ;;  %v663_v63 = vrot.slane %v662_v45, 2  ;;  %v1062_v34 = vsel %vm1973_vm1, %v2170_v12, 0.0  ;;  %vm2461_vm1 = vnez %v2460_v56 }
 0x25f   : > { %v669_v25 = vrot.slane %v668_v15, 2  ;;  %v675_v3 = vrot.slane %v674_v55, 2  ;;  %v681_v23 = vrot.slane %v680_v33, 2 }
 0x260   : > { %v658_v30 = vadd.f32 %v657_v11, %v656_v59  ;;  %v664_v43 = vadd.f32 %v663_v63, %v662_v45  ;;  %v2453_v59 = vld [vmem:[#allocation15_spill] sm:$0xff] }
 0x261   : > { %v670_v57 = vadd.f32 %v669_v25, %v668_v15  ;;  %v676_v16 = vadd.f32 %v675_v3, %v674_v55  ;;  %v682_v54 = vadd.f32 %v681_v23, %v680_v33  ;;  %v2463_v55 = vld [vmem:[#allocation12_spill] sm:$0xff]  ;;  %v2465_v33 = vld [vmem:[#allocation19_spill] sm:$0xff] }
 0x262   : > { %v659_v8 = vrot.slane %v658_v30, 1  ;;  %v665_v2 = vrot.slane %v664_v43, 1 }
 0x263   : > { %v671_v49 = vrot.slane %v670_v57, 1  ;;  %v677_v19 = vrot.slane %v676_v16, 1  ;;  %v683_v40 = vrot.slane %v682_v54, 1 }
 0x264   : > { %v660_v4 = vadd.f32 %v659_v8, %v658_v30  ;;  %v666_v60 = vadd.f32 %v665_v2, %v664_v43 }
 0x265   : > { %v672_v44 = vadd.f32 %v671_v49, %v670_v57  ;;  %v678_v7 = vadd.f32 %v677_v19, %v676_v16  ;;  %v684_v32 = vadd.f32 %v683_v40, %v682_v54 }
 0x266   : > { %vm695_vm5 = vcmp.gt.f32.partialorder %v660_v4, 0.0  ;;  %vm696_vm14 = vcmp.gt.f32.partialorder %v666_v60, 0.0 }
 0x267   : > { %vm697_vm7 = vcmp.gt.f32.partialorder %v672_v44, 0.0  ;;  %vm698_vm9 = vcmp.gt.f32.partialorder %v678_v7, 0.0  ;;  %vm699_vm10 = vcmp.gt.f32.partialorder %v684_v32, 0.0  ;;  %v700_v39 = vsel %vm695_vm5, 1.0, %v2117_v18 }
 0x268   : > { %v701_v21 = vsel %vm696_vm14, 1.0, %v2122_v14  ;;  %v702_v31 = vsel %vm697_vm7, 1.0, %v2126_v6  ;;  %v703_v52 = vsel %vm698_vm9, 1.0, %v2130_v13  ;;  %v704_v0 = vsel %vm699_vm10, 1.0, %v2135_v22  ;;  %v2445_v13 = vld [vmem:[#allocation14_spill] sm:$0xff]  ;;  %v2448_v22 = vld [vmem:[#allocation13_spill] sm:$0xff] }
 0x269   : > { %v710_v42 = vsel %vm705_vm0, 1.0, %v700_v39  ;;  %v711_v26 = vsel %vm706_vm11, 1.0, %v701_v21  ;;  %v712_v28 = vsel %vm707_vm8, 1.0, %v702_v31  ;;  %v713_v18 = vsel %vm708_vm4, 1.0, %v703_v52 }
 0x26a   : > { %v714_v14 = vsel %vm709_vm3, 1.0, %v704_v0  ;;  %vm2446_vm14 = vnez %v2445_v13  ;;  %vm2449_vm0 = vnez %v2448_v22  ;;  %vm2451_vm11 = vnez %v2450_v35 }
 0x26b   : > { %vm2447_vm7 = vmand %vm1798_vm15, %vm2446_vm14  ;;  %vm2454_vm8 = vnez %v2453_v59  ;;  %vm2456_vm4 = vnez %v2455_v38  ;;  %vm1139_vm5 = vcmask 1044480   ;;  %vm2459_vm3 = vnez %v2458_v53 }
 0x26c   : > { %v715_v29 = vsel %vm2447_vm7, %v710_v42, -1.0  ;;  %vm2452_vm9 = vmand %vm2449_vm0, %vm2451_vm11  ;;  %vm2464_vm15 = vnez %v2463_v55  ;;  %vm2466_vm14 = vnez %v2465_v33 }
 0x26d   : > { %v716_v36 = vsel %vm2452_vm9, %v711_v26, -1.0  ;;  %vm2457_vm10 = vmand %vm2454_vm8, %vm2456_vm4  ;;  %vm1063_vm0 = vcmp.eq.f32.partialorder %v715_v29, 1.0  ;;  %vm1145_vm9 = vcmask 1045504   ;;  %v1093_v57 = vrot.slane %v715_v29, 6 }
 0x26e   : > { %v717_v45 = vsel %vm2457_vm10, %v712_v28, -1.0  ;;  %vm2462_vm12 = vmand %vm2459_vm3, %vm2461_vm1  ;;  %vm1064_vm11 = vcmp.eq.f32.partialorder %v716_v36, 1.0  ;;  %v1068_v17 = vsel %vm1063_vm0, 1.0, %v2438_v51  ;;  %vm1073_vm1 = vcmp.ge.f32.partialorder %v715_v29, 0.0 }
 0x26f   : > { %v718_v15 = vsel %vm2462_vm12, %v713_v18, -1.0  ;;  %vm2467_vm7 = vmand %vm2464_vm15, %vm2466_vm14  ;;  %vm1065_vm8 = vcmp.eq.f32.partialorder %v717_v45, 1.0  ;;  %v1069_v11 = vsel %vm1064_vm11, 1.0, %v2438_v51  ;;  %vm1151_vm12 = vcmask 1046528  }
 0x270   : > { %v719_v9 = vsel %vm2467_vm7, %v714_v14, -1.0  ;;  %vm1066_vm4 = vcmp.eq.f32.partialorder %v718_v15, 1.0  ;;  %v1070_v63 = vsel %vm1065_vm8, 1.0, %v2438_v51  ;;  %vm1074_vm3 = vcmp.ge.f32.partialorder %v716_v36, 0.0 }
 0x271   : > { %vm1067_vm10 = vcmp.eq.f32.partialorder %v719_v9, 1.0  ;;  %v1071_v48 = vsel %vm1066_vm4, 1.0, %v2438_v51  ;;  %vm1075_vm15 = vcmp.ge.f32.partialorder %v717_v45, 0.0  ;;  %vm1076_vm14 = vcmp.ge.f32.partialorder %v718_v15, 0.0 }
 0x272   : > { %v1072_v25 = vsel %vm1067_vm10, 1.0, %v2438_v51  ;;  %vm1077_vm7 = vcmp.ge.f32.partialorder %v719_v9, 0.0  ;;  %v1280_v3 = vsel %vm1073_vm1, 1.0, %v2438_v51  ;;  %v1281_v23 = vsel %vm1074_vm3, 1.0, %v2438_v51 }
 0x273   : > { %v1282_v10 = vsel %vm1075_vm15, 1.0, %v2438_v51  ;;  %v1283_v30 = vsel %vm1076_vm14, 1.0, %v2438_v51  ;;  %v1284_v43 = vsel %vm1077_vm7, 1.0, %v2438_v51  ;;  %v1094_v16 = vrot.slane %v716_v36, 6 }
 0x274   : > { %v1095_v54 = vrot.slane %v717_v45, 6  ;;  %v1096_v8 = vrot.slane %v718_v15, 6  ;;  %v1097_v2 = vrot.slane %v719_v9, 6  ;;  %v1108_v49 = vrot.slane %v1068_v17, 5 }
 0x275   : > { %v1109_v19 = vrot.slane %v1069_v11, 5  ;;  %v1110_v40 = vrot.slane %v1070_v63, 5  ;;  %v1111_v4 = vrot.slane %v1071_v48, 5  ;;  %v1112_v60 = vrot.slane %v1072_v25, 5 }
 0x276   : > { %v1123_v44 = vrot.slane %v1280_v3, 4  ;;  %v1124_v7 = vrot.slane %v1281_v23, 4  ;;  %v1125_v32 = vrot.slane %v1282_v10, 4  ;;  %v1126_v39 = vrot.slane %v1283_v30, 4 }
 0x277   : > { %v1127_v21 = vrot.slane %v1284_v43, 4  ;;  %vm2468_vm0 = vcmask 1043456  }
 0x278   : > { %v1134_v51 = vsel %vm2468_vm0, %v1058_v27, %v1093_v57  ;;  %vm2469_vm11 = vmmov %vm2468_vm0 }
 0x279   : > { %v1135_v31 = vsel %vm2469_vm11, %v1059_v5, %v1094_v16  ;;  %vm2470_vm8 = vmmov %vm2468_vm0  ;;  %v1140_v1 = vsel %vm1139_vm5, %v1134_v51, %v1108_v49 }
 0x27a   : > { %v1136_v52 = vsel %vm2470_vm8, %v1060_v41, %v1095_v54  ;;  %vm2472_vm13 = vmmov %vm2468_vm0  ;;  %v1141_v27 = vsel %vm1139_vm5, %v1135_v31, %v1109_v19  ;;  %v1146_v5 = vsel %vm1145_vm9, %v1140_v1, %v1123_v44 }
 0x27b   : > { %v1137_v37 = vsel %vm2472_vm13, %v1061_v46, %v1096_v8  ;;  %vm2474_vm6 = vmmov %vm2468_vm0  ;;  %v1142_v58 = vsel %vm1139_vm5, %v1136_v52, %v1110_v40  ;;  %v1147_v50 = vsel %vm1145_vm9, %v1141_v27, %v1124_v7  ;;  %v1152_v46 = vsel %vm1151_vm12, %v1146_v5, 0.0 }
 0x27c   : > { %v1138_v61 = vsel %vm2474_vm6, %v1062_v34, %v1097_v2  ;;  %v1143_v20 = vsel %vm1139_vm5, %v1137_v37, %v1111_v4  ;;  %v1148_v12 = vsel %vm1145_vm9, %v1142_v58, %v1125_v32  ;;  %v1153_v62 = vsel %vm1151_vm12, %v1147_v50, 0.0  ;;  %1157 = vst [vmem:[%s190_s7] sm:$0xff] %v1152_v46 }
 0x27d   : > { %v1144_v24 = vsel %vm1139_vm5, %v1138_v61, %v1112_v60  ;;  %v1149_v41 = vsel %vm1145_vm9, %v1143_v20, %v1126_v39  ;;  %v1154_v34 = vsel %vm1151_vm12, %v1148_v12, 0.0  ;;  %1158 = vst [vmem:[%s190_s7 + $0x8] sm:$0xff] %v1153_v62 }
 0x27e   : > { %v1150_v47 = vsel %vm1145_vm9, %v1144_v24, %v1127_v21  ;;  %v1155_v0 = vsel %vm1151_vm12, %v1149_v41, 0.0  ;;  %1159 = vst [vmem:[%s190_s7 + $0x10] sm:$0xff] %v1154_v34 }
 0x27f   : > { %v1156_v42 = vsel %vm1151_vm12, %v1150_v47, 0.0  ;;  %1160 = vst [vmem:[%s190_s7 + $0x18] sm:$0xff] %v1155_v0 }
 0x280   : > { %1161 = vst [vmem:[%s190_s7 + $0x20] sm:$0xff] %v1156_v42 }
 0x281   : > { %1455 = shalt.err (!%p1452_p1)
}
 0x282   : > { %s1456_s25 = scalar_lea.hbm %s2283_s10, 640  ;;  %s1460_s28 = scalar_lea.hbm %s2330_s3, 1280 }
 0x283   : > { %p1457_p2 = scmp.ne.s32.totalorder %s2283_s10, %s1456_s25  ;;  %p1461_p5 = scmp.lt.s32.totalorder %s2283_s10, %s2330_s3 }
 0x284   : > { %p1462_p6 = scmp.lt.s32.totalorder %s1460_s28, %s1456_s25 }
 0x285   : > { %p1458_p3 = pnand %p1457_p2, %p2475_p0 }
 0x286   : > { %p1463_p10 = por %p1462_p6, %p1461_p5 }
 0x287   : > { %p1459_p9 = pneg %p1458_p3 }
 0x289   : > { %p1464_p12 = pnand %p1463_p10, %p1459_p9 }
 0x28b   : > { %1467 = shalt.err (!%p1464_p12)
}
 0x28c   : > { %1298 = dma.vmem_to_hbm [thread:$0]  (%p2475_p0), %s2285_s8, 640, %s2283_s10, %s1163_s11  }
 0x28d PF: > { %p1315_p4 = scmp.ge.s32.totalorder %s1510_s15, 2  ;;  %s1189_s4 = sand.u32 1, %s1498_s12  }
 0x28e   : > { %p2476_p7 = scmp.ne.s32.totalorder %s2374_s23, 0  ;;  %s1190_s5 = scalar_lea.sflag [#allocation4], %s1189_s4 }
 0x290   : > { %p1308_p8 = pnand %p1315_p4, %p2476_p7 }
 0x292   : > { %p1309_p11 = pneg %p1308_p8 }
 0x294   : > { %1493 = dma.done.wait (%p1309_p11), %s1190_s5, 640  }
 0x295   : > { %1495 = vsyncadd (%p1309_p11), %s1190_s5, 4294966656  ;;  %p15_p13 = scmp.ge.s32.totalorder %s1570_s18, 4   ;;  %s2477_s12 = smov %s1502_s13 }
 0x296   : > { %s2478_s13 = smov %s1506_s14  ;;  %s2479_s14 = smov %s1581_s21 }
 0x297   : > { %s2480_s15 = smov %s1570_s18  ;;  %17 = sbr.rel (!%p15_p13) target bundleno = 5 (0x5), region = 77 }
 0x29c   :  { %1195 = vsyncpa [#allocation3], 1 }
 0x29d   :  { %1197 = vsyncpa [#allocation3 + $0x1], 1 }
 0x29e   :  { %1198 = vsyncpa [#allocation4], 1 }
 0x29f   :  { %1200 = vsyncpa [#allocation4 + $0x1], 1 }
 0x2a0   :  { %1201 = vsyncpa [#allocation5], 1 }
 0x2a1   :  { %1203 = vsyncpa [#allocation5 + $0x1], 1 }

</bundles_post_ra>
